<compile_context>
chip_gen: v6e
topology: v6e:2x2x1
jax: 0.10.0
libtpu: 0.0.40
codegen_flags: <defaults>
</compile_context>

<pallas_src>
import math

import jax
import jax.numpy as jnp
from jax.experimental import pallas as pl
from jax.experimental.pallas import tpu as pltpu


def _round_up(a: int, b: int) -> int:
    return (a + b - 1) // b * b


def _vmem_limit_bytes() -> int:
    # Generation-aware scoped-VMEM limit: ~3/4 of physical (64 MiB on v7x ->
    # 48 MiB, 128 MiB on v5e/v6e -> 96 MiB), with a safe fallback.
    try:
        cap = int(pltpu.get_tpu_info().vmem_capacity_bytes)
    except Exception:
        cap = 64 * 1024 * 1024
    return max(32 * 1024 * 1024, min(cap * 3 // 4, 100 * 1024 * 1024))


# Row indices inside the fused (16, C) resident constant table.
_ROW_BQ = 0      # scaled q bias: (pos[0] @ Wq.T + bq) / sqrt(C)
_ROW_BK = 1      # rows 1..3: per-token k bias: pos[i] @ Wk.T + bk
_ROW_BV = 4      # rows 4..6: per-token v bias: pos[i] @ Wv.T + bv
_ROW_BC = 7      # c_proj bias with Gaussian-smoothing residual folded in
_ROW_FREQ = 8    # sinusoidal frequencies (duplicated halves)
_ROW_PHASE = 9   # 0 for the sin half, pi/2 for the cos half


def _attn_pool_kernel(x_ref, t_ref, w3_ref, wc_ref, tab_ref, o_ref):
    C = wc_ref.shape[0]

    x = x_ref[...]                                # (TN, 2C) caller dtype
    x0 = x[:, :C].astype(jnp.bfloat16)            # pose token 0 (aligned iff C%128==0)
    x1 = x[:, C:].astype(jnp.bfloat16)            # pose token 1

    wq = w3_ref[0]                                # (C, C) bf16, 1/sqrt(C) pre-folded
    wk = w3_ref[1]
    wv = w3_ref[2]

    # Project only the two raw pose tokens; the mean-token q/k0/v0 are linear
    # combinations of these projections (no (3*TN, C) concatenate).
    p0q = jnp.dot(x0, wq, preferred_element_type=jnp.float32)
    p1q = jnp.dot(x1, wq, preferred_element_type=jnp.float32)
    p0k = jnp.dot(x0, wk, preferred_element_type=jnp.float32)
    p1k = jnp.dot(x1, wk, preferred_element_type=jnp.float32)
    p0v = jnp.dot(x0, wv, preferred_element_type=jnp.float32)
    p1v = jnp.dot(x1, wv, preferred_element_type=jnp.float32)

    tab = tab_ref[...]                            # (16, C) f32 bias/constant slab
    q  = 0.5 * (p0q + p1q) + tab[_ROW_BQ:_ROW_BQ + 1]
    k0 = 0.5 * (p0k + p1k) + tab[_ROW_BK + 0:_ROW_BK + 1]
    k1 = p0k + tab[_ROW_BK + 1:_ROW_BK + 2]
    k2 = p1k + tab[_ROW_BK + 2:_ROW_BK + 3]
    v0 = 0.5 * (p0v + p1v) + tab[_ROW_BV + 0:_ROW_BV + 1]
    v1 = p0v + tab[_ROW_BV + 1:_ROW_BV + 2]
    v2 = p1v + tab[_ROW_BV + 2:_ROW_BV + 3]

    # Scaled dot-product attention over the 3 tokens (head_dim = C, H = 1).
    l0 = jnp.sum(q * k0, axis=-1, keepdims=True)          # (TN, 1)
    l1 = jnp.sum(q * k1, axis=-1, keepdims=True)
    l2 = jnp.sum(q * k2, axis=-1, keepdims=True)
    m = jnp.maximum(jnp.maximum(l0, l1), l2)
    e0 = jnp.exp(l0 - m)
    e1 = jnp.exp(l1 - m)
    e2 = jnp.exp(l2 - m)
    inv = pl.reciprocal(e0 + e1 + e2, approx=True)         # EUP slot
    attn = (e0 * inv) * v0 + (e1 * inv) * v1 + (e2 * inv) * v2   # (TN, C)

    # Output projection; the Gaussian-smoothing residual (y + smooth(y)) is a
    # linear map over C and is folded into wc_eff / bc_eff by prepare_params.
    y = jnp.dot(attn.astype(jnp.bfloat16), wc_ref[...],
                preferred_element_type=jnp.float32) + tab[_ROW_BC:_ROW_BC + 1]

    # Sinusoidal time embedding: sin(t*f + phase); phase = pi/2 selects cos.
    t = t_ref[...].astype(jnp.float32)                     # (TN, 1)
    y = y + jnp.sin(t * tab[_ROW_FREQ:_ROW_FREQ + 1]
                    + tab[_ROW_PHASE:_ROW_PHASE + 1])

    o_ref[...] = y.astype(o_ref.dtype)


def prepare_params(params, noise_level=0.3, num_heads=1):
    """One-time parameter preparation (hoisted out of the hot path)."""
    assert num_heads == 1, "head splitting for num_heads > 1 not implemented"
    C = params["wq"].shape[0]
    assert C % 2 == 0 and C >= 4, "C must be even and >= 4 (sinusoidal embed)"
    f32 = jnp.float32

    pos = params["pos_emb"].astype(f32)                    # (3, C)
    wq_t = params["wq"].astype(f32).T                      # x @ wq_t == x @ Wq.T
    wk_t = params["wk"].astype(f32).T
    wv_t = params["wv"].astype(f32).T
    bq = params["bq"].astype(f32)
    bk = params["bk"].astype(f32)
    bv = params["bv"].astype(f32)

    scale = 1.0 / math.sqrt(C / num_heads)                 # MHA head_dim ** -0.5

    # --- Gaussian smoothing residual folded into c_proj (linear over C) -----
    # TODO(synk): GaussianSmoothing class was not provided; assumed the usual
    # normalized 3-tap Gaussian depthwise conv1d (sigma=noise_level, no bias)
    # on reflect-padded input, with a `y + smooth(y)` residual.
    sigma = float(noise_level)
    g = [math.exp(-0.5 * ((i - 1.0) / sigma) ** 2) for i in range(3)]
    s = g[0] + g[1] + g[2]
    w_off, w_ctr = g[0] / s, g[1] / s
    eye = jnp.eye(C, dtype=f32)
    K = (w_ctr * eye
         + w_off * (jnp.eye(C, k=1, dtype=f32) + jnp.eye(C, k=-1, dtype=f32)))
    K = K.at[0, 1].add(w_off).at[C - 1, C - 2].add(w_off)  # reflect pad (1, 1)
    M = (eye + K).T                                        # y + smooth(y) == y @ M
    wc_eff = params["wc"].astype(f32).T @ M                # (C, C)
    bc_eff = params["bc"].astype(f32) @ M                  # (C,)

    # --- fused resident bias / constant table (16, C) -----------------------
    half = C // 2
    freqs = jnp.exp(jnp.arange(half, dtype=f32)
                    * (-math.log(10000.0) / (half - 1)))
    tab = jnp.zeros((16, C), f32)
    tab = tab.at[_ROW_BQ].set((pos[0] @ wq_t + bq) * scale)
    tab = tab.at[_ROW_BK:_ROW_BK + 3].set(pos @ wk_t + bk)
    tab = tab.at[_ROW_BV:_ROW_BV + 3].set(pos @ wv_t + bv)
    tab = tab.at[_ROW_BC].set(bc_eff)
    tab = tab.at[_ROW_FREQ].set(jnp.concatenate([freqs, freqs]))
    tab = tab.at[_ROW_PHASE].set(jnp.concatenate(
        [jnp.zeros((half,), f32), jnp.full((half,), 0.5 * math.pi, f32)]))

    # bf16 matmul operands (MXU-native); f32 accumulation happens in-kernel.
    w3 = jnp.stack([wq_t * scale, wk_t, wv_t]).astype(jnp.bfloat16)  # (3, C, C)
    return {"w3": w3, "wc": wc_eff.astype(jnp.bfloat16), "tab": tab, "C": C}


_SINGLE_BUFFER_OK = {"ok": None}   # probed once; resident blocks single-buffer


def attention_pool1d(x, time_step, prepared):
    """x: (N, 2, C) float; time_step: (N,). Returns (N, C) in x.dtype."""
    N, L, C = x.shape
    assert L == 2, "AttentionPool1d expects exactly 2 pose tokens"
    assert C == prepared["C"]

    x2 = x.reshape(N, 2 * C)          # free reshape: no transpose/astype/pad
    t2 = time_step.reshape(N, 1)

    # Batch tile: large tiles amortize per-step overhead; capped by C so
    # weights + intermediates fit v7x VMEM; force >= 2 grid steps when N allows
    # so the "parallel" axis can be sharded across both v7x TensorCores.
    tn_cap = 1024 if C <= 512 else (512 if C <= 1024 else 256)
    TN = min(tn_cap, _round_up(N, 8))
    if N > 8 and pl.cdiv(N, TN) < 2:
        TN = max(8, _round_up(pl.cdiv(N, 2), 8))
    grid = pl.cdiv(N, TN)             # ragged last tile handled by Pallas masking

    def run(single_buffer):
        def resident(shape):
            imap = (lambda i: (0, 0)) if len(shape) == 2 else (lambda i: (0, 0, 0))
            if single_buffer:
                return pl.BlockSpec(shape, imap, pipeline_mode=pl.Buffered(1))
            return pl.BlockSpec(shape, imap)

        return pl.pallas_call(
            _attn_pool_kernel,
            out_shape=jax.ShapeDtypeStruct((N, C), x.dtype),
            grid=(grid,),
            in_specs=[
                pl.BlockSpec((TN, 2 * C), lambda i: (i, 0)),   # x (streamed)
                pl.BlockSpec((TN, 1), lambda i: (i, 0)),       # time_step
                resident((3, C, C)),                           # wq|wk|wv (bf16)
                resident((C, C)),                              # wc_eff (bf16)
                resident((16, C)),                             # bias/sin table
            ],
            out_specs=pl.BlockSpec((TN, C), lambda i: (i, 0)),
            compiler_params=pltpu.CompilerParams(
                dimension_semantics=("parallel",),             # megacore on v7x
                vmem_limit_bytes=_vmem_limit_bytes()),
        )(x2, t2, prepared["w3"], prepared["wc"], prepared["tab"])

    sb = _SINGLE_BUFFER_OK["ok"]
    if sb is None:
        try:
            out = jax.block_until_ready(run(True))
            _SINGLE_BUFFER_OK["ok"] = True
            return out
        except Exception:
            # Fallback: this JAX build rejects single-buffered resident blocks.
            _SINGLE_BUFFER_OK["ok"] = False
            return run(False)
    return run(sb)


def init_params(key, C):
    ks = jax.random.split(key, 9)
    bound = 1.0 / math.sqrt(C)
    uni = lambda k, shape: jax.random.uniform(k, shape, jnp.float32, -bound, bound)
    return {
        "pos_emb": jax.random.normal(ks[0], (3, C), jnp.float32) / math.sqrt(C),
        "wq": uni(ks[1], (C, C)), "bq": uni(ks[2], (C,)),
        "wk": uni(ks[3], (C, C)), "bk": uni(ks[4], (C,)),
        "wv": uni(ks[5], (C, C)), "bv": uni(ks[6], (C,)),
        "wc": uni(ks[7], (C, C)), "bc": uni(ks[8], (C,)),
    }


if __name__ == "__main__":
    N, C = 2, 32
    key = jax.random.PRNGKey(0)
    k_params, k_x = jax.random.split(key)

    params = init_params(k_params, C)
    prepared = prepare_params(params, noise_level=0.3, num_heads=1)

    x = jax.random.normal(k_x, (N, 2, C), jnp.float32)     # (batch, 2 poses, C)
    time_step = jnp.array([1.0, 7.0], jnp.float32)         # (N,)

    out = attention_pool1d(x, time_step, prepared)
    out = jax.block_until_ready(out)
    assert out.shape == (N, C) and out.dtype == jnp.float32
    print("KERNEL_OK")
</pallas_src>

<mosaic_0001>
module attributes {stable_mosaic.version = 11 : i64} {
  func.func @_attn_pool_kernel(%arg0: i32, %arg1: memref<8x64xf32, #tpu.memory_space<vmem>>, %arg2: memref<8x1xf32, #tpu.memory_space<vmem>>, %arg3: memref<3x32x32xbf16, #tpu.memory_space<vmem>>, %arg4: memref<32x32xbf16, #tpu.memory_space<vmem>>, %arg5: memref<16x32xf32, #tpu.memory_space<vmem>>, %arg6: memref<8x32xf32, #tpu.memory_space<vmem>>) attributes {dimension_semantics = [#tpu.dimension_semantics<parallel>], iteration_bounds = array<i64: 1>, scalar_prefetch = 0 : i64, scratch_operands = 0 : i64, tpu.core_type = #tpu.core_type<tc>, window_params = [{transform_indices = @transform_0, window_bounds = array<i64: 8, 64>}, {transform_indices = @transform_1, window_bounds = array<i64: 8, 1>}, {pipeline_mode = #tpu.pipeline_mode<synchronous>, transform_indices = @transform_2, window_bounds = array<i64: 3, 32, 32>}, {pipeline_mode = #tpu.pipeline_mode<synchronous>, transform_indices = @transform_3, window_bounds = array<i64: 32, 32>}, {pipeline_mode = #tpu.pipeline_mode<synchronous>, transform_indices = @transform_4, window_bounds = array<i64: 16, 32>}, {transform_indices = @transform_5, window_bounds = array<i64: 8, 32>}]} {
    %c0 = arith.constant 0 : index
    %c0_0 = arith.constant 0 : index
    %0 = vector.load %arg1[%c0, %c0_0] : memref<8x64xf32, #tpu.memory_space<vmem>>, vector<8x64xf32>
    %1 = vector.extract_strided_slice %0 {offsets = [0, 0], sizes = [8, 32], strides = [1, 1]} : vector<8x64xf32> to vector<8x32xf32>
    %2 = arith.truncf %1 : vector<8x32xf32> to vector<8x32xbf16>
    %3 = vector.extract_strided_slice %0 {offsets = [0, 32], sizes = [8, 32], strides = [1, 1]} : vector<8x64xf32> to vector<8x32xf32>
    %4 = arith.truncf %3 : vector<8x32xf32> to vector<8x32xbf16>
    %c0_1 = arith.constant 0 : index
    %c0_2 = arith.constant 0 : index
    %c0_3 = arith.constant 0 : index
    %5 = vector.load %arg3[%c0_1, %c0_2, %c0_3] : memref<3x32x32xbf16, #tpu.memory_space<vmem>>, vector<1x32x32xbf16>
    %6 = vector.shape_cast %5 : vector<1x32x32xbf16> to vector<32x32xbf16>
    %c1 = arith.constant 1 : index
    %c0_4 = arith.constant 0 : index
    %c0_5 = arith.constant 0 : index
    %7 = vector.load %arg3[%c1, %c0_4, %c0_5] : memref<3x32x32xbf16, #tpu.memory_space<vmem>>, vector<1x32x32xbf16>
    %8 = vector.shape_cast %7 : vector<1x32x32xbf16> to vector<32x32xbf16>
    %c2 = arith.constant 2 : index
    %c0_6 = arith.constant 0 : index
    %c0_7 = arith.constant 0 : index
    %9 = vector.load %arg3[%c2, %c0_6, %c0_7] : memref<3x32x32xbf16, #tpu.memory_space<vmem>>, vector<1x32x32xbf16>
    %10 = vector.shape_cast %9 : vector<1x32x32xbf16> to vector<32x32xbf16>
    %cst = arith.constant dense<0.000000e+00> : vector<8x32xf32>
    %11 = tpu.matmul %2, %6, %cst {dimension_numbers = #tpu.dot_dimension_numbers<[1], [0], [0], [1], [0, 0, 1, 1], [], []>} : vector<8x32xbf16>, vector<32x32xbf16>, vector<8x32xf32> -> vector<8x32xf32>
    %cst_8 = arith.constant dense<0.000000e+00> : vector<8x32xf32>
    %12 = tpu.matmul %4, %6, %cst_8 {dimension_numbers = #tpu.dot_dimension_numbers<[1], [0], [0], [1], [0, 0, 1, 1], [], []>} : vector<8x32xbf16>, vector<32x32xbf16>, vector<8x32xf32> -> vector<8x32xf32>
    %cst_9 = arith.constant dense<0.000000e+00> : vector<8x32xf32>
    %13 = tpu.matmul %2, %8, %cst_9 {dimension_numbers = #tpu.dot_dimension_numbers<[1], [0], [0], [1], [0, 0, 1, 1], [], []>} : vector<8x32xbf16>, vector<32x32xbf16>, vector<8x32xf32> -> vector<8x32xf32>
    %cst_10 = arith.constant dense<0.000000e+00> : vector<8x32xf32>
    %14 = tpu.matmul %4, %8, %cst_10 {dimension_numbers = #tpu.dot_dimension_numbers<[1], [0], [0], [1], [0, 0, 1, 1], [], []>} : vector<8x32xbf16>, vector<32x32xbf16>, vector<8x32xf32> -> vector<8x32xf32>
    %cst_11 = arith.constant dense<0.000000e+00> : vector<8x32xf32>
    %15 = tpu.matmul %2, %10, %cst_11 {dimension_numbers = #tpu.dot_dimension_numbers<[1], [0], [0], [1], [0, 0, 1, 1], [], []>} : vector<8x32xbf16>, vector<32x32xbf16>, vector<8x32xf32> -> vector<8x32xf32>
    %cst_12 = arith.constant dense<0.000000e+00> : vector<8x32xf32>
    %16 = tpu.matmul %4, %10, %cst_12 {dimension_numbers = #tpu.dot_dimension_numbers<[1], [0], [0], [1], [0, 0, 1, 1], [], []>} : vector<8x32xbf16>, vector<32x32xbf16>, vector<8x32xf32> -> vector<8x32xf32>
    %c0_13 = arith.constant 0 : index
    %c0_14 = arith.constant 0 : index
    %17 = vector.load %arg5[%c0_13, %c0_14] : memref<16x32xf32, #tpu.memory_space<vmem>>, vector<16x32xf32>
    %18 = arith.addf %11, %12 : vector<8x32xf32>
    %cst_15 = arith.constant 5.000000e-01 : f32
    %19 = vector.broadcast %cst_15 : f32 to vector<8x32xf32>
    %20 = arith.mulf %19, %18 : vector<8x32xf32>
    %21 = vector.extract_strided_slice %17 {offsets = [0, 0], sizes = [1, 32], strides = [1, 1]} : vector<16x32xf32> to vector<1x32xf32>
    %22 = vector.broadcast %21 : vector<1x32xf32> to vector<8x32xf32>
    %23 = arith.addf %20, %22 : vector<8x32xf32>
    %24 = arith.addf %13, %14 : vector<8x32xf32>
    %cst_16 = arith.constant 5.000000e-01 : f32
    %25 = vector.broadcast %cst_16 : f32 to vector<8x32xf32>
    %26 = arith.mulf %25, %24 : vector<8x32xf32>
    %27 = vector.extract_strided_slice %17 {offsets = [1, 0], sizes = [1, 32], strides = [1, 1]} : vector<16x32xf32> to vector<1x32xf32>
    %28 = vector.broadcast %27 : vector<1x32xf32> to vector<8x32xf32>
    %29 = arith.addf %26, %28 : vector<8x32xf32>
    %30 = vector.extract_strided_slice %17 {offsets = [2, 0], sizes = [1, 32], strides = [1, 1]} : vector<16x32xf32> to vector<1x32xf32>
    %31 = vector.broadcast %30 : vector<1x32xf32> to vector<8x32xf32>
    %32 = arith.addf %13, %31 : vector<8x32xf32>
    %33 = vector.extract_strided_slice %17 {offsets = [3, 0], sizes = [1, 32], strides = [1, 1]} : vector<16x32xf32> to vector<1x32xf32>
    %34 = vector.broadcast %33 : vector<1x32xf32> to vector<8x32xf32>
    %35 = arith.addf %14, %34 : vector<8x32xf32>
    %36 = arith.addf %15, %16 : vector<8x32xf32>
    %cst_17 = arith.constant 5.000000e-01 : f32
    %37 = vector.broadcast %cst_17 : f32 to vector<8x32xf32>
    %38 = arith.mulf %37, %36 : vector<8x32xf32>
    %39 = vector.extract_strided_slice %17 {offsets = [4, 0], sizes = [1, 32], strides = [1, 1]} : vector<16x32xf32> to vector<1x32xf32>
    %40 = vector.broadcast %39 : vector<1x32xf32> to vector<8x32xf32>
    %41 = arith.addf %38, %40 : vector<8x32xf32>
    %42 = vector.extract_strided_slice %17 {offsets = [5, 0], sizes = [1, 32], strides = [1, 1]} : vector<16x32xf32> to vector<1x32xf32>
    %43 = vector.broadcast %42 : vector<1x32xf32> to vector<8x32xf32>
    %44 = arith.addf %15, %43 : vector<8x32xf32>
    %45 = vector.extract_strided_slice %17 {offsets = [6, 0], sizes = [1, 32], strides = [1, 1]} : vector<16x32xf32> to vector<1x32xf32>
    %46 = vector.broadcast %45 : vector<1x32xf32> to vector<8x32xf32>
    %47 = arith.addf %16, %46 : vector<8x32xf32>
    %48 = arith.mulf %23, %29 : vector<8x32xf32>
    %cst_18 = arith.constant dense<0.000000e+00> : vector<8xf32>
    %49 = vector.multi_reduction <add>, %48, %cst_18 [1] : vector<8x32xf32> to vector<8xf32>
    %50 = vector.shape_cast %49 : vector<8xf32> to vector<8x1xf32>
    %51 = arith.mulf %23, %32 : vector<8x32xf32>
    %cst_19 = arith.constant dense<0.000000e+00> : vector<8xf32>
    %52 = vector.multi_reduction <add>, %51, %cst_19 [1] : vector<8x32xf32> to vector<8xf32>
    %53 = vector.shape_cast %52 : vector<8xf32> to vector<8x1xf32>
    %54 = arith.mulf %23, %35 : vector<8x32xf32>
    %cst_20 = arith.constant dense<0.000000e+00> : vector<8xf32>
    %55 = vector.multi_reduction <add>, %54, %cst_20 [1] : vector<8x32xf32> to vector<8xf32>
    %56 = vector.shape_cast %55 : vector<8xf32> to vector<8x1xf32>
    %57 = arith.maximumf %50, %53 : vector<8x1xf32>
    %58 = arith.maximumf %57, %56 : vector<8x1xf32>
    %59 = arith.subf %50, %58 : vector<8x1xf32>
    %60 = math.exp %59 : vector<8x1xf32>
    %61 = arith.subf %53, %58 : vector<8x1xf32>
    %62 = math.exp %61 : vector<8x1xf32>
    %63 = arith.subf %56, %58 : vector<8x1xf32>
    %64 = math.exp %63 : vector<8x1xf32>
    %65 = arith.addf %60, %62 : vector<8x1xf32>
    %66 = arith.addf %65, %64 : vector<8x1xf32>
    %67 = tpu.reciprocal %66 {approx = true} : vector<8x1xf32> -> vector<8x1xf32>
    %68 = arith.mulf %60, %67 : vector<8x1xf32>
    %69 = vector.broadcast %68 : vector<8x1xf32> to vector<8x32xf32>
    %70 = arith.mulf %69, %41 : vector<8x32xf32>
    %71 = arith.mulf %62, %67 : vector<8x1xf32>
    %72 = vector.broadcast %71 : vector<8x1xf32> to vector<8x32xf32>
    %73 = arith.mulf %72, %44 : vector<8x32xf32>
    %74 = arith.addf %70, %73 : vector<8x32xf32>
    %75 = arith.mulf %64, %67 : vector<8x1xf32>
    %76 = vector.broadcast %75 : vector<8x1xf32> to vector<8x32xf32>
    %77 = arith.mulf %76, %47 : vector<8x32xf32>
    %78 = arith.addf %74, %77 : vector<8x32xf32>
    %79 = arith.truncf %78 : vector<8x32xf32> to vector<8x32xbf16>
    %c0_21 = arith.constant 0 : index
    %c0_22 = arith.constant 0 : index
    %80 = vector.load %arg4[%c0_21, %c0_22] : memref<32x32xbf16, #tpu.memory_space<vmem>>, vector<32x32xbf16>
    %cst_23 = arith.constant dense<0.000000e+00> : vector<8x32xf32>
    %81 = tpu.matmul %79, %80, %cst_23 {dimension_numbers = #tpu.dot_dimension_numbers<[1], [0], [0], [1], [0, 0, 1, 1], [], []>} : vector<8x32xbf16>, vector<32x32xbf16>, vector<8x32xf32> -> vector<8x32xf32>
    %82 = vector.extract_strided_slice %17 {offsets = [7, 0], sizes = [1, 32], strides = [1, 1]} : vector<16x32xf32> to vector<1x32xf32>
    %83 = vector.broadcast %82 : vector<1x32xf32> to vector<8x32xf32>
    %84 = arith.addf %81, %83 : vector<8x32xf32>
    %c0_24 = arith.constant 0 : index
    %c0_25 = arith.constant 0 : index
    %85 = vector.load %arg2[%c0_24, %c0_25] : memref<8x1xf32, #tpu.memory_space<vmem>>, vector<8x1xf32>
    %86 = vector.extract_strided_slice %17 {offsets = [8, 0], sizes = [1, 32], strides = [1, 1]} : vector<16x32xf32> to vector<1x32xf32>
    %87 = vector.broadcast %85 : vector<8x1xf32> to vector<8x32xf32>
    %88 = vector.broadcast %86 : vector<1x32xf32> to vector<8x32xf32>
    %89 = arith.mulf %87, %88 : vector<8x32xf32>
    %90 = vector.extract_strided_slice %17 {offsets = [9, 0], sizes = [1, 32], strides = [1, 1]} : vector<16x32xf32> to vector<1x32xf32>
    %91 = vector.broadcast %90 : vector<1x32xf32> to vector<8x32xf32>
    %92 = arith.addf %89, %91 : vector<8x32xf32>
    %93 = math.sin %92 : vector<8x32xf32>
    %94 = arith.addf %84, %93 : vector<8x32xf32>
    %c0_26 = arith.constant 0 : index
    %c0_27 = arith.constant 0 : index
    %95 = vector.load %arg6[%c0_26, %c0_27] : memref<8x32xf32, #tpu.memory_space<vmem>>, vector<8x32xf32>
    tpu.vector_store %arg6[%c0_26, %c0_27], %94 {strides = array<i32>} : memref<8x32xf32, #tpu.memory_space<vmem>>, vector<8x32xf32>,
    return
  }
  func.func @transform_0(%arg0: i32) -> (i32, i32) {
    %c0_i32 = arith.constant 0 : i32
    %c0_i32_0 = arith.constant 0 : i32
    return %arg0, %c0_i32 : i32, i32
  }
  func.func @transform_1(%arg0: i32) -> (i32, i32) {
    %c0_i32 = arith.constant 0 : i32
    %c0_i32_0 = arith.constant 0 : i32
    return %arg0, %c0_i32 : i32, i32
  }
  func.func @transform_2(%arg0: i32) -> (i32, i32, i32) {
    %c0_i32 = arith.constant 0 : i32
    %c0_i32_0 = arith.constant 0 : i32
    %c0_i32_1 = arith.constant 0 : i32
    %c0_i32_2 = arith.constant 0 : i32
    return %c0_i32, %c0_i32_0, %c0_i32_1 : i32, i32, i32
  }
  func.func @transform_3(%arg0: i32) -> (i32, i32) {
    %c0_i32 = arith.constant 0 : i32
    %c0_i32_0 = arith.constant 0 : i32
    %c0_i32_1 = arith.constant 0 : i32
    return %c0_i32, %c0_i32_0 : i32, i32
  }
  func.func @transform_4(%arg0: i32) -> (i32, i32) {
    %c0_i32 = arith.constant 0 : i32
    %c0_i32_0 = arith.constant 0 : i32
    %c0_i32_1 = arith.constant 0 : i32
    return %c0_i32, %c0_i32_0 : i32, i32
  }
  func.func @transform_5(%arg0: i32) -> (i32, i32) {
    %c0_i32 = arith.constant 0 : i32
    %c0_i32_0 = arith.constant 0 : i32
    return %arg0, %c0_i32 : i32, i32
  }
}

module attributes {stable_mosaic.version = 11 : i64} {
  func.func @_attn_pool_kernel(%arg0: i32, %arg1: memref<8x64xf32, #tpu.memory_space<vmem>>, %arg2: memref<8x1xf32, #tpu.memory_space<vmem>>, %arg3: memref<3x32x32xbf16, #tpu.memory_space<vmem>>, %arg4: memref<32x32xbf16, #tpu.memory_space<vmem>>, %arg5: memref<16x32xf32, #tpu.memory_space<vmem>>, %arg6: memref<8x32xf32, #tpu.memory_space<vmem>>) attributes {dimension_semantics = [#tpu.dimension_semantics<parallel>], iteration_bounds = array<i64: 1>, scalar_prefetch = 0 : i64, scratch_operands = 0 : i64, tpu.core_type = #tpu.core_type<tc>, window_params = [{transform_indices = @transform_0, window_bounds = array<i64: 8, 64>}, {transform_indices = @transform_1, window_bounds = array<i64: 8, 1>}, {pipeline_mode = #tpu.pipeline_mode<synchronous>, transform_indices = @transform_2, window_bounds = array<i64: 3, 32, 32>}, {pipeline_mode = #tpu.pipeline_mode<synchronous>, transform_indices = @transform_3, window_bounds = array<i64: 32, 32>}, {pipeline_mode = #tpu.pipeline_mode<synchronous>, transform_indices = @transform_4, window_bounds = array<i64: 16, 32>}, {transform_indices = @transform_5, window_bounds = array<i64: 8, 32>}]} {
    %c0 = arith.constant 0 : index
    %c0_0 = arith.constant 0 : index
    %0 = vector.load %arg1[%c0, %c0_0] : memref<8x64xf32, #tpu.memory_space<vmem>>, vector<8x64xf32>
    %1 = vector.extract_strided_slice %0 {offsets = [0, 0], sizes = [8, 32], strides = [1, 1]} : vector<8x64xf32> to vector<8x32xf32>
    %2 = arith.truncf %1 : vector<8x32xf32> to vector<8x32xbf16>
    %3 = vector.extract_strided_slice %0 {offsets = [0, 32], sizes = [8, 32], strides = [1, 1]} : vector<8x64xf32> to vector<8x32xf32>
    %4 = arith.truncf %3 : vector<8x32xf32> to vector<8x32xbf16>
    %c0_1 = arith.constant 0 : index
    %c0_2 = arith.constant 0 : index
    %c0_3 = arith.constant 0 : index
    %5 = vector.load %arg3[%c0_1, %c0_2, %c0_3] : memref<3x32x32xbf16, #tpu.memory_space<vmem>>, vector<1x32x32xbf16>
    %6 = vector.shape_cast %5 : vector<1x32x32xbf16> to vector<32x32xbf16>
    %c1 = arith.constant 1 : index
    %c0_4 = arith.constant 0 : index
    %c0_5 = arith.constant 0 : index
    %7 = vector.load %arg3[%c1, %c0_4, %c0_5] : memref<3x32x32xbf16, #tpu.memory_space<vmem>>, vector<1x32x32xbf16>
    %8 = vector.shape_cast %7 : vector<1x32x32xbf16> to vector<32x32xbf16>
    %c2 = arith.constant 2 : index
    %c0_6 = arith.constant 0 : index
    %c0_7 = arith.constant 0 : index
    %9 = vector.load %arg3[%c2, %c0_6, %c0_7] : memref<3x32x32xbf16, #tpu.memory_space<vmem>>, vector<1x32x32xbf16>
    %10 = vector.shape_cast %9 : vector<1x32x32xbf16> to vector<32x32xbf16>
    %cst = arith.constant dense<0.000000e+00> : vector<8x32xf32>
    %11 = tpu.matmul %2, %6, %cst {dimension_numbers = #tpu.dot_dimension_numbers<[1], [0], [0], [1], [0, 0, 1, 1], [], []>} : vector<8x32xbf16>, vector<32x32xbf16>, vector<8x32xf32> -> vector<8x32xf32>
    %cst_8 = arith.constant dense<0.000000e+00> : vector<8x32xf32>
    %12 = tpu.matmul %4, %6, %cst_8 {dimension_numbers = #tpu.dot_dimension_numbers<[1], [0], [0], [1], [0, 0, 1, 1], [], []>} : vector<8x32xbf16>, vector<32x32xbf16>, vector<8x32xf32> -> vector<8x32xf32>
    %cst_9 = arith.constant dense<0.000000e+00> : vector<8x32xf32>
    %13 = tpu.matmul %2, %8, %cst_9 {dimension_numbers = #tpu.dot_dimension_numbers<[1], [0], [0], [1], [0, 0, 1, 1], [], []>} : vector<8x32xbf16>, vector<32x32xbf16>, vector<8x32xf32> -> vector<8x32xf32>
    %cst_10 = arith.constant dense<0.000000e+00> : vector<8x32xf32>
    %14 = tpu.matmul %4, %8, %cst_10 {dimension_numbers = #tpu.dot_dimension_numbers<[1], [0], [0], [1], [0, 0, 1, 1], [], []>} : vector<8x32xbf16>, vector<32x32xbf16>, vector<8x32xf32> -> vector<8x32xf32>
    %cst_11 = arith.constant dense<0.000000e+00> : vector<8x32xf32>
    %15 = tpu.matmul %2, %10, %cst_11 {dimension_numbers = #tpu.dot_dimension_numbers<[1], [0], [0], [1], [0, 0, 1, 1], [], []>} : vector<8x32xbf16>, vector<32x32xbf16>, vector<8x32xf32> -> vector<8x32xf32>
    %cst_12 = arith.constant dense<0.000000e+00> : vector<8x32xf32>
    %16 = tpu.matmul %4, %10, %cst_12 {dimension_numbers = #tpu.dot_dimension_numbers<[1], [0], [0], [1], [0, 0, 1, 1], [], []>} : vector<8x32xbf16>, vector<32x32xbf16>, vector<8x32xf32> -> vector<8x32xf32>
    %c0_13 = arith.constant 0 : index
    %c0_14 = arith.constant 0 : index
    %17 = vector.load %arg5[%c0_13, %c0_14] : memref<16x32xf32, #tpu.memory_space<vmem>>, vector<16x32xf32>
    %18 = arith.addf %11, %12 : vector<8x32xf32>
    %cst_15 = arith.constant 5.000000e-01 : f32
    %19 = vector.broadcast %cst_15 : f32 to vector<8x32xf32>
    %20 = arith.mulf %19, %18 : vector<8x32xf32>
    %21 = vector.extract_strided_slice %17 {offsets = [0, 0], sizes = [1, 32], strides = [1, 1]} : vector<16x32xf32> to vector<1x32xf32>
    %22 = vector.broadcast %21 : vector<1x32xf32> to vector<8x32xf32>
    %23 = arith.addf %20, %22 : vector<8x32xf32>
    %24 = arith.addf %13, %14 : vector<8x32xf32>
    %cst_16 = arith.constant 5.000000e-01 : f32
    %25 = vector.broadcast %cst_16 : f32 to vector<8x32xf32>
    %26 = arith.mulf %25, %24 : vector<8x32xf32>
    %27 = vector.extract_strided_slice %17 {offsets = [1, 0], sizes = [1, 32], strides = [1, 1]} : vector<16x32xf32> to vector<1x32xf32>
    %28 = vector.broadcast %27 : vector<1x32xf32> to vector<8x32xf32>
    %29 = arith.addf %26, %28 : vector<8x32xf32>
    %30 = vector.extract_strided_slice %17 {offsets = [2, 0], sizes = [1, 32], strides = [1, 1]} : vector<16x32xf32> to vector<1x32xf32>
    %31 = vector.broadcast %30 : vector<1x32xf32> to vector<8x32xf32>
    %32 = arith.addf %13, %31 : vector<8x32xf32>
    %33 = vector.extract_strided_slice %17 {offsets = [3, 0], sizes = [1, 32], strides = [1, 1]} : vector<16x32xf32> to vector<1x32xf32>
    %34 = vector.broadcast %33 : vector<1x32xf32> to vector<8x32xf32>
    %35 = arith.addf %14, %34 : vector<8x32xf32>
    %36 = arith.addf %15, %16 : vector<8x32xf32>
    %cst_17 = arith.constant 5.000000e-01 : f32
    %37 = vector.broadcast %cst_17 : f32 to vector<8x32xf32>
    %38 = arith.mulf %37, %36 : vector<8x32xf32>
    %39 = vector.extract_strided_slice %17 {offsets = [4, 0], sizes = [1, 32], strides = [1, 1]} : vector<16x32xf32> to vector<1x32xf32>
    %40 = vector.broadcast %39 : vector<1x32xf32> to vector<8x32xf32>
    %41 = arith.addf %38, %40 : vector<8x32xf32>
    %42 = vector.extract_strided_slice %17 {offsets = [5, 0], sizes = [1, 32], strides = [1, 1]} : vector<16x32xf32> to vector<1x32xf32>
    %43 = vector.broadcast %42 : vector<1x32xf32> to vector<8x32xf32>
    %44 = arith.addf %15, %43 : vector<8x32xf32>
    %45 = vector.extract_strided_slice %17 {offsets = [6, 0], sizes = [1, 32], strides = [1, 1]} : vector<16x32xf32> to vector<1x32xf32>
    %46 = vector.broadcast %45 : vector<1x32xf32> to vector<8x32xf32>
    %47 = arith.addf %16, %46 : vector<8x32xf32>
    %48 = arith.mulf %23, %29 : vector<8x32xf32>
    %cst_18 = arith.constant dense<0.000000e+00> : vector<8xf32>
    %49 = vector.multi_reduction <add>, %48, %cst_18 [1] : vector<8x32xf32> to vector<8xf32>
    %50 = vector.shape_cast %49 : vector<8xf32> to vector<8x1xf32>
    %51 = arith.mulf %23, %32 : vector<8x32xf32>
    %cst_19 = arith.constant dense<0.000000e+00> : vector<8xf32>
    %52 = vector.multi_reduction <add>, %51, %cst_19 [1] : vector<8x32xf32> to vector<8xf32>
    %53 = vector.shape_cast %52 : vector<8xf32> to vector<8x1xf32>
    %54 = arith.mulf %23, %35 : vector<8x32xf32>
    %cst_20 = arith.constant dense<0.000000e+00> : vector<8xf32>
    %55 = vector.multi_reduction <add>, %54, %cst_20 [1] : vector<8x32xf32> to vector<8xf32>
    %56 = vector.shape_cast %55 : vector<8xf32> to vector<8x1xf32>
    %57 = arith.maximumf %50, %53 : vector<8x1xf32>
    %58 = arith.maximumf %57, %56 : vector<8x1xf32>
    %59 = arith.subf %50, %58 : vector<8x1xf32>
    %60 = math.exp %59 : vector<8x1xf32>
    %61 = arith.subf %53, %58 : vector<8x1xf32>
    %62 = math.exp %61 : vector<8x1xf32>
    %63 = arith.subf %56, %58 : vector<8x1xf32>
    %64 = math.exp %63 : vector<8x1xf32>
    %65 = arith.addf %60, %62 : vector<8x1xf32>
    %66 = arith.addf %65, %64 : vector<8x1xf32>
    %67 = tpu.reciprocal %66 {approx = true} : vector<8x1xf32> -> vector<8x1xf32>
    %68 = arith.mulf %60, %67 : vector<8x1xf32>
    %69 = vector.broadcast %68 : vector<8x1xf32> to vector<8x32xf32>
    %70 = arith.mulf %69, %41 : vector<8x32xf32>
    %71 = arith.mulf %62, %67 : vector<8x1xf32>
    %72 = vector.broadcast %71 : vector<8x1xf32> to vector<8x32xf32>
    %73 = arith.mulf %72, %44 : vector<8x32xf32>
    %74 = arith.addf %70, %73 : vector<8x32xf32>
    %75 = arith.mulf %64, %67 : vector<8x1xf32>
    %76 = vector.broadcast %75 : vector<8x1xf32> to vector<8x32xf32>
    %77 = arith.mulf %76, %47 : vector<8x32xf32>
    %78 = arith.addf %74, %77 : vector<8x32xf32>
    %79 = arith.truncf %78 : vector<8x32xf32> to vector<8x32xbf16>
    %c0_21 = arith.constant 0 : index
    %c0_22 = arith.constant 0 : index
    %80 = vector.load %arg4[%c0_21, %c0_22] : memref<32x32xbf16, #tpu.memory_space<vmem>>, vector<32x32xbf16>
    %cst_23 = arith.constant dense<0.000000e+00> : vector<8x32xf32>
    %81 = tpu.matmul %79, %80, %cst_23 {dimension_numbers = #tpu.dot_dimension_numbers<[1], [0], [0], [1], [0, 0, 1, 1], [], []>} : vector<8x32xbf16>, vector<32x32xbf16>, vector<8x32xf32> -> vector<8x32xf32>
    %82 = vector.extract_strided_slice %17 {offsets = [7, 0], sizes = [1, 32], strides = [1, 1]} : vector<16x32xf32> to vector<1x32xf32>
    %83 = vector.broadcast %82 : vector<1x32xf32> to vector<8x32xf32>
    %84 = arith.addf %81, %83 : vector<8x32xf32>
    %c0_24 = arith.constant 0 : index
    %c0_25 = arith.constant 0 : index
    %85 = vector.load %arg2[%c0_24, %c0_25] : memref<8x1xf32, #tpu.memory_space<vmem>>, vector<8x1xf32>
    %86 = vector.extract_strided_slice %17 {offsets = [8, 0], sizes = [1, 32], strides = [1, 1]} : vector<16x32xf32> to vector<1x32xf32>
    %87 = vector.broadcast %85 : vector<8x1xf32> to vector<8x32xf32>
    %88 = vector.broadcast %86 : vector<1x32xf32> to vector<8x32xf32>
    %89 = arith.mulf %87, %88 : vector<8x32xf32>
    %90 = vector.extract_strided_slice %17 {offsets = [9, 0], sizes = [1, 32], strides = [1, 1]} : vector<16x32xf32> to vector<1x32xf32>
    %91 = vector.broadcast %90 : vector<1x32xf32> to vector<8x32xf32>
    %92 = arith.addf %89, %91 : vector<8x32xf32>
    %93 = math.sin %92 : vector<8x32xf32>
    %94 = arith.addf %84, %93 : vector<8x32xf32>
    %c0_26 = arith.constant 0 : index
    %c0_27 = arith.constant 0 : index
    %95 = vector.load %arg6[%c0_26, %c0_27] : memref<8x32xf32, #tpu.memory_space<vmem>>, vector<8x32xf32>
    tpu.vector_store %arg6[%c0_26, %c0_27], %94 {strides = array<i32>} : memref<8x32xf32, #tpu.memory_space<vmem>>, vector<8x32xf32>,
    return
  }
  func.func @transform_0(%arg0: i32) -> (i32, i32) {
    %c0_i32 = arith.constant 0 : i32
    %c0_i32_0 = arith.constant 0 : i32
    return %arg0, %c0_i32 : i32, i32
  }
  func.func @transform_1(%arg0: i32) -> (i32, i32) {
    %c0_i32 = arith.constant 0 : i32
    %c0_i32_0 = arith.constant 0 : i32
    return %arg0, %c0_i32 : i32, i32
  }
  func.func @transform_2(%arg0: i32) -> (i32, i32, i32) {
    %c0_i32 = arith.constant 0 : i32
    %c0_i32_0 = arith.constant 0 : i32
    %c0_i32_1 = arith.constant 0 : i32
    %c0_i32_2 = arith.constant 0 : i32
    return %c0_i32, %c0_i32_0, %c0_i32_1 : i32, i32, i32
  }
  func.func @transform_3(%arg0: i32) -> (i32, i32) {
    %c0_i32 = arith.constant 0 : i32
    %c0_i32_0 = arith.constant 0 : i32
    %c0_i32_1 = arith.constant 0 : i32
    return %c0_i32, %c0_i32_0 : i32, i32
  }
  func.func @transform_4(%arg0: i32) -> (i32, i32) {
    %c0_i32 = arith.constant 0 : i32
    %c0_i32_0 = arith.constant 0 : i32
    %c0_i32_1 = arith.constant 0 : i32
    return %c0_i32, %c0_i32_0 : i32, i32
  }
  func.func @transform_5(%arg0: i32) -> (i32, i32) {
    %c0_i32 = arith.constant 0 : i32
    %c0_i32_0 = arith.constant 0 : i32
    return %arg0, %c0_i32 : i32, i32
  }
}

</mosaic_0001>

<bundles_post_ra>
// kernel: tpu_custom_call.1
= control target key start
LH: loop header
LB: loop body
LE: loop exit
PB: predicated region body
PF: predicated region fallthrough
CT: control target
= control target key end

     0   :  { %10 = vsyncpa [#allocation3], 0  ;;  %s1045_s0 = inlined_call_operand.vmem [shape: f32[2,64], index: 0, kind: input, shape index: {}]   ;;  %s1046_s1 = inlined_call_operand.vmem [shape: f32[2,1], index: 1, kind: input, shape index: {}]   ;;  %s1047_s2 = inlined_call_operand.hbm [shape: bf16[3,32,32], index: 2, kind: input, shape index: {}]   ;;  %s1048_s3 = inlined_call_operand.hbm [shape: bf16[32,32], index: 3, kind: input, shape index: {}]   ;;  %s1049_s4 = inlined_call_operand.hbm [shape: f32[16,32], index: 4, kind: input, shape index: {}]   ;;  %s1050_s5 = inlined_call_operand.hbm [shape: f32[2,32], index: 5, kind: output, shape index: {}]  }
   0x1   :  { %11 = vsyncpa [#allocation6], 0 }
   0x2   :  { %12 = vsyncpa [#allocation4], 0  ;;  %s873_s18 = smov [#allocation5]   ;;  %s874_s20 = smov [#allocation2]  }
   0x3   :  { %s34_s19 = sshll.u32 %s873_s18, 4  ;;  %s22_s21 = sshll.u32 %s874_s20, 4  ;;  %s35_s19 = int_to_ptr.vmem [resolvable:$true] %s34_s19  ;;  %s23_s21 = int_to_ptr.vmem [resolvable:$true] %s22_s21 }
   0x4   :  { %s795_s22 = scalar_lea.vmem %s35_s19, 256  ;;  %p800_p1 = scmp.lt.s32.totalorder %s35_s19, %s35_s19 }
   0x5   :  { %p796_p0 = scmp.ne.s32.totalorder %s35_s19, %s795_s22  ;;  %p801_p2 = scmp.lt.s32.totalorder %s795_s22, %s795_s22 }
   0x7   :  { %p802_p3 = por %p801_p2, %p800_p1 }
   0x9   :  { %p803_p4 = pnand %p802_p3, %p796_p0 }
   0xb   :  { %806 = shalt.err (!%p803_p4)
}
   0xc   :  { %s875_s23 = smov 64   ;;  %s876_s24 = smov 4  }
   0xd   :  { %40 = dma.hbm_to_vmem [thread:$0]  %s1048_s3, 256, %s35_s19, [#allocation6], %s875_s23, %s875_s23, %s876_s24  }
   0xe   :  { %s815_s27 = scalar_lea.vmem %s23_s21, 768  ;;  %p820_p6 = scmp.lt.s32.totalorder %s23_s21, %s23_s21 }
   0xf   :  { %p816_p5 = scmp.ne.s32.totalorder %s23_s21, %s815_s27  ;;  %p821_p7 = scmp.lt.s32.totalorder %s815_s27, %s815_s27 }
  0x11   :  { %p822_p8 = por %p821_p7, %p820_p6 }
  0x13   :  { %p823_p9 = pnand %p822_p8, %p816_p5 }
  0x15   :  { %826 = shalt.err (!%p823_p9)
}
  0x16   :  { %28 = dma.hbm_to_vmem [thread:$0]  %s1047_s2, 768, %s23_s21, [#allocation3], %s875_s23, %s875_s23, %s876_s24  }
  0x17   :  { %s877_s30 = smov [#allocation7]  }
  0x18   :  { %s46_s6 = sshll.u32 %s877_s30, 4  ;;  %s47_s6 = int_to_ptr.vmem [resolvable:$true] %s46_s6 }
  0x19   :  { %s835_s7 = scalar_lea.vmem %s47_s6, 256  ;;  %p840_p11 = scmp.lt.s32.totalorder %s47_s6, %s47_s6 }
  0x1a   :  { %p836_p10 = scmp.ne.s32.totalorder %s47_s6, %s835_s7  ;;  %p841_p12 = scmp.lt.s32.totalorder %s835_s7, %s835_s7 }
  0x1c   :  { %p842_p13 = por %p841_p12, %p840_p11 }
  0x1e   :  { %p843_p0 = pnand %p842_p13, %p836_p10 }
  0x20   :  { %846 = shalt.err (!%p843_p0)
}
  0x21   :  { %s878_s3 = smov 128   ;;  %s879_s8 = smov 8  }
  0x22   :  { %52 = dma.hbm_to_vmem [thread:$0]  %s1049_s4, 256, %s47_s6, [#allocation6], %s878_s3, %s878_s3, %s879_s8  }
  0x23   :  { %867 = dma.done.wait [#allocation3], 768  }
  0x24   :  { %868 = vsyncadd [#allocation3], 4294966528 }
  0x25   :  { %869 = dma.done.wait [#allocation6], 512  }
  0x26   :  { %870 = vsyncadd [#allocation6], 4294966784  ;;  %v880_v0 = vmov 0.0   ;;  %vm881_vm0 = vmmov 0   ;;  %v63_v1 = vld [vmem:[%s1045_s0] sm:$0xff]  ;;  %v767_v3 = vld [vmem:[#allocation2 + $0x18] sm:$0xff]   ;;  %v368_v23 = vlaneseq }
  0x27   :  { %693 = vmatprep.subr.bf16.mxu1 %v880_v0  ;;  %697 = vmatprep.mubr.msk.bf16.mxu1 %vm881_vm0, %v880_v0  ;;  %v64_v2 = vpack.c.bf16 %v63_v1, %v63_v1  ;;  %s882_s4 = smov 96   ;;  %v768_v4 = vld [vmem:[#allocation2 + $0x10] sm:$0xff]   ;;  %v771_v5 = vld [vmem:[#allocation2 + $0x8] sm:$0xff]   ;;  %vm94_vm1 = vcmask 261120   ;;  %v772_v7 = vld [vmem:[#allocation2] sm:$0xff]   ;;  %v883_v12 = vmov 0  }
  0x28   :  { %685 = vmatprep.subr.bf16.mxu0 %v880_v0  ;;  %689 = vmatprep.mubr.msk.bf16.mxu0 %vm881_vm0, %v880_v0  ;;  %v769_v6 = vld [vmem:[#allocation2 + $0x28] sm:$0xff]   ;;  %v770_v8 = vld [vmem:[#allocation2 + $0x20] sm:$0xff]   ;;  %v970_v24 = vshrl.u32 %v368_v23, 7  ;;  %v773_v61 = vld [vmem:[#allocation5 + $0x8] sm:$0xff]  }
  0x29   :  { %80 = vrot.lane.b32.xlu0 %v64_v2, %s882_s4  ;;  %694 = vmatpush3.bf16.msra.mxu1 %v767_v3  ;;  %v974_v27 = vld [vmem:[#allocation7] sm:$0xff]  ;;  %v774_v62 = vld [vmem:[#allocation5] sm:$0xff]  }
  0x2a   :  { %695 = vmatprep.subr.bf16.mxu1 %v880_v0  ;;  %686 = vmatpush3.bf16.msra.mxu0 %v771_v5  ;;  %v382_v25 = vsub.s32 2, %v970_v24  ;;  %v370_v26 = vsub.s32 0, %v970_v24  ;;  %v387_v32 = vsub.s32 3, %v970_v24  ;;  %v377_v38 = vsub.s32 1, %v970_v24  ;;  %v505_v60 = vld [vmem:[%s1046_s1] sm:$0xff] }
  0x2b   :  { %687 = vmatprep.subr.bf16.mxu0 %v880_v0  ;;  %765 = vset.pattern.permute.xlu1 %v883_v12 }
  0x2c   :  { %766 = vset.pattern.permute.xlu0 %v883_v12  ;;  %v383_v29 = vrot.slane %v974_v27, %v382_v25  ;;  %v371_v31 = vrot.slane %v974_v27, %v370_v26  ;;  %v388_v39 = vrot.slane %v974_v27, %v387_v32  ;;  %v378_v44 = vrot.slane %v974_v27, %v377_v38 }
  0x2d   :  { %696 = vmatpush3.bf16.msra.mxu1 %v768_v4 }
  0x2e   :  { %709 = vmatprep.subr.bf16.mxu1 %v880_v0  ;;  %688 = vmatpush3.bf16.msra.mxu0 %v772_v7 }
  0x2f   :  { %701 = vmatprep.subr.bf16.mxu0 %v880_v0 }
  0x30   :  { %698 = vmatmul.mubr.msk.bf16.vlgmr.msra.gmra.mxu1 %vm94_vm1, %v64_v2 }
  0x31   :  { %710 = vmatpush3.bf16.msra.mxu1 %v769_v6  ;;  %713 = vmatprep.mubr.msk.bf16.mxu1 %vm881_vm0, %v880_v0 }
  0x32   :  { %711 = vmatprep.subr.bf16.mxu1 %v880_v0 }
  0x35   :  { %712 = vmatpush3.bf16.msra.mxu1 %v770_v8 }
  0x36   :  { %725 = vmatprep.subr.bf16.mxu1 %v880_v0 }
  0x38   :  { %714 = vmatmul.mubr.msk.bf16.vlgmr.msra.gmra.mxu1 %vm94_vm1, %v64_v2 }
  0x39   :  { %726 = vmatpush3.bf16.msra.mxu1 %v771_v5  ;;  %729 = vmatprep.mubr.msk.bf16.mxu1 %vm881_vm0, %v880_v0 }
  0x3a   :  { %727 = vmatprep.subr.bf16.mxu1 %v880_v0 }
  0x3d   :  { %728 = vmatpush3.bf16.msra.mxu1 %v772_v7 }
  0x40   :  { %730 = vmatmul.mubr.msk.bf16.vlgmr.msra.gmra.mxu1 %vm94_vm1, %v64_v2 }
  0x9b   :  { %v81_v9 = vpop.permute.xlu0 %80 }
  0x9c   :  { %690 = vmatmul.mubr.msk.bf16.vlgmr.msra.gmra.mxu0 %vm94_vm1, %v81_v9 }
  0x9d   :  { %702 = vmatpush3.bf16.msra.mxu0 %v767_v3  ;;  %705 = vmatprep.mubr.msk.bf16.mxu0 %vm881_vm0, %v880_v0 }
  0x9e   :  { %703 = vmatprep.subr.bf16.mxu0 %v880_v0 }
  0xa1   :  { %704 = vmatpush3.bf16.msra.mxu0 %v768_v4 }
  0xa2   :  { %717 = vmatprep.subr.bf16.mxu0 %v880_v0 }
  0xa4   :  { %706 = vmatmul.mubr.msk.bf16.vlgmr.msra.gmra.mxu0 %vm94_vm1, %v81_v9 }
  0xa5   :  { %718 = vmatpush3.bf16.msra.mxu0 %v769_v6  ;;  %721 = vmatprep.mubr.msk.bf16.mxu0 %vm881_vm0, %v880_v0 }
  0xa6   :  { %719 = vmatprep.subr.bf16.mxu0 %v880_v0 }
  0xa9   :  { %720 = vmatpush3.bf16.msra.mxu0 %v770_v8 }
  0xaa   :  { %733 = vmatprep.subr.bf16.mxu0 %v880_v0 }
  0xac   :  { %722 = vmatmul.mubr.msk.bf16.vlgmr.msra.gmra.mxu0 %vm94_vm1, %v81_v9 }
  0xad   :  { %737 = vmatprep.mubr.msk.bf16.mxu0 %vm881_vm0, %v880_v0  ;;  %734 = vmatpush3.bf16.msra.mxu0 %v773_v61 }
  0xae   :  { %735 = vmatprep.subr.bf16.mxu0 %v880_v0 }
  0xb1   :  { %736 = vmatpush3.bf16.msra.mxu0 %v774_v62  ;;  %v888_v62 = vmov 2475754826  }
  0xf0   :  { %v187_v10 = vpop.f32.mrf.mxu1 }
  0xf1   :  { %v384_v36 = vadd.f32 %v383_v29, %v187_v10 }
  0xf2   :  { %v699_v11 = vpop.f32.mrf.mxu1 }
  0xf4   :  { %v190_v13 = vpop.f32.mrf.mxu1 }
  0xf6   :  { %v700_v14 = vpop.f32.mrf.mxu1 }
  0xf8   :  { %v968_v15 = vpop.f32.mrf.mxu1 }
  0xfa   :  { %v715_v16 = vpop.f32.mrf.mxu1 }
  0xfb   :  { %v399_v16 = vsub.s32 5, %v970_v24 }
  0xfc   :  { %v282_v17 = vpop.f32.mrf.mxu1 }
  0xfe   :  { %v716_v18 = vpop.f32.mrf.mxu1 }
  0xff   :  { %v394_v18 = vsub.s32 4, %v970_v24 }
 0x100   :  { %v361_v19 = vpop.f32.mrf.mxu1 }
 0x102   :  { %v731_v20 = vpop.f32.mrf.mxu1 }
 0x103   :  { %v400_v20 = vrot.slane %v974_v27, %v399_v16 }
 0x104   :  { %v364_v21 = vpop.f32.mrf.mxu1 }
 0x106   :  { %v732_v22 = vpop.f32.mrf.mxu1 }
 0x107   :  { %v395_v22 = vrot.slane %v974_v27, %v394_v18 }
 0x15c   :  { %v132_v28 = vpop.f32.mrf.mxu0 }
 0x15d   :  { %v362_v30 = vadd.f32 %v361_v19, %v132_v28  ;;  %v404_v19 = vsub.s32 6, %v970_v24  ;;  %v401_v28 = vadd.f32 %v400_v20, %v968_v15 }
 0x15e   :  { %v691_v33 = vpop.f32.mrf.mxu0 }
 0x15f   :  { %v367_v34 = vmul.f32 0.5, %v362_v30  ;;  %v405_v23 = vrot.slane %v974_v27, %v404_v19 }
 0x160   :  { %v135_v35 = vpop.f32.mrf.mxu0 }
 0x161   :  { %v372_v37 = vadd.f32 %v371_v31, %v367_v34 }
 0x162   :  { %v692_v40 = vpop.f32.mrf.mxu0 }
 0x163   :  { %v411_v41 = vmul.f32 %v384_v36, %v372_v37 }
 0x164   :  { %v227_v42 = vpop.f32.mrf.mxu0 }
 0x165   :  { %v373_v43 = vadd.f32 %v227_v42, %v187_v10  ;;  %v389_v45 = vadd.f32 %v388_v39, %v227_v42  ;;  %v412_v46 = vsel %vm94_vm1, %v411_v41, 0.0  ;;  %v326_v41 = vld [vmem:[#allocation7 + $0x8] sm:$0xff] }
 0x166   :  { %v707_v47 = vpop.f32.mrf.mxu0  ;;  %413 = vadd.xlane.f32.xlu1 %v412_v46  ;;  %v514_v42 = vrot.slane %v326_v41, %v370_v26 }
 0x167   :  { %v374_v48 = vmul.f32 0.5, %v373_v43  ;;  %v415_v49 = vmul.f32 %v389_v45, %v372_v37 }
 0x168   :  { %v230_v50 = vpop.f32.mrf.mxu0 }
 0x169   :  { %v379_v51 = vadd.f32 %v378_v44, %v374_v48  ;;  %v416_v52 = vsel %vm94_vm1, %v415_v49, 0.0 }
 0x16a   :  { %v708_v53 = vpop.f32.mrf.mxu0  ;;  %417 = vadd.xlane.f32.xlu1 %v416_v52 }
 0x16b   :  { %v407_v54 = vmul.f32 %v379_v51, %v372_v37  ;;  %v884_v53 = vmov 2102212464  }
 0x16c   :  { %v319_v55 = vpop.f32.mrf.mxu0 }
 0x16d   :  { %v408_v56 = vsel %vm94_vm1, %v407_v54, 0.0  ;;  %v390_v17 = vadd.f32 %v319_v55, %v968_v15  ;;  %v406_v33 = vadd.f32 %v405_v23, %v319_v55  ;;  %v519_v15 = vrot.slane %v326_v41, %v377_v38 }
 0x16e   :  { %v723_v57 = vpop.f32.mrf.mxu0  ;;  %409 = vadd.xlane.f32.xlu0 %v408_v56  ;;  %v885_v55 = vmov 920167782  }
 0x16f   :  { %v391_v21 = vmul.f32 0.5, %v390_v17 }
 0x170   :  { %v322_v58 = vpop.f32.mrf.mxu0 }
 0x171   :  { %v396_v29 = vadd.f32 %v395_v22, %v391_v21  ;;  %v886_v58 = vmov 1326507024  }
 0x172   :  { %v724_v59 = vpop.f32.mrf.mxu0 }
 0x17b   :  { %508 = vperm.xlu1 %765, %v505_v60   ;;  %v887_v60 = vmov 683565275  }
 0x1ef   :  { %v414_v63 = vpop.xlane.xlu1 %413 }
 0x1f3   :  { %v418_v3 = vpop.xlane.xlu1 %417 }
 0x1f7   :  { %v410_v1 = vpop.xlane.xlu0 %409  ;;  %v509_v43 = vpop.permute.xlu1 %508 }
 0x1f8   :  { %v419_v2 = vmax.f32 %v410_v1, %v414_v63  ;;  %v515_v44 = vmul.f32 %v514_v42, %v509_v43 }
 0x1fa   :  { %v420_v4 = vmax.f32 %v419_v2, %v418_v3  ;;  %v1006_v45 = vadd.f32 %v519_v15, %v515_v44  ;;  %v889_v2 = vmov 2131351028  }
 0x1fc   :  { %v421_v5 = vsub.f32 %v410_v1, %v420_v4  ;;  %v424_v6 = vsub.f32 %v414_v63, %v420_v4  ;;  %v427_v7 = vsub.f32 %v418_v3, %v420_v4  ;;  %v524_v46 = vand.u32 2139095040, %v1006_v45 }
 0x1fd   :  { %v521_v59 = vand.u32 2147483647, %v1006_v45  ;;  %vm523_vm9 = vcmp.lt.s32.totalorder %v1006_v45, 0  ;;  %vm613_vm14 = vweird.f32 %v1006_v45 }
 0x1fe   :  { %v422_v8 = vmul.f32 1.442695, %v421_v5  ;;  %v425_v9 = vmul.f32 1.442695, %v424_v6  ;;  %v428_v10 = vmul.f32 1.442695, %v427_v7 }
 0x1ff   :  { %v525_v47 = vshrl.u32 %v524_v46, 23  ;;  %vm522_vm10 = vcmp.le.f32.partialorder %v521_v59, 0.7853982 }
 0x200   :  { %775 = vpow2.f32 %v422_v8  ;;  %v528_v8 = vand.u32 8388607, %v521_v59 }
 0x201   :  { %777 = vpow2.f32 %v425_v9  ;;  %v660_v48 = vadd.s32 4294967169, %v525_v47 }
 0x202   :  { %779 = vpow2.f32 %v428_v10 }
 0x203   :  { %v531_v49 = vadd.s32 1, %v660_v48 }
 0x205   :  { %vm532_vm2 = vcmp.gt.s32.totalorder %v531_v49, 0 }
 0x206   :  { %v533_v50 = vsel %vm532_vm2, %v531_v49, 0 }
 0x207   :  { %v535_v51 = vand.u32 31, %v533_v50  ;;  %v534_v56 = vshrl.u32 %v533_v50, 5 }
 0x209   :  { %v536_v52 = vsub.s32 32, %v535_v51  ;;  %v547_v54 = vshll.u32 %v884_v53, %v535_v51  ;;  %v550_v57 = vshll.u32 %v885_v55, %v535_v51  ;;  %v538_v61 = vshll.u32 %v887_v60, %v535_v51 }
 0x20a   :  { %v541_v63 = vshll.u32 %v888_v62, %v535_v51  ;;  %v544_v4 = vshll.u32 %v889_v2, %v535_v51  ;;  %vm556_vm3 = vcmp.lt.s32.totalorder %v534_v56, 4  ;;  %vm553_vm4 = vcmp.lt.s32.totalorder %v534_v56, 1 }
 0x20b   :  { %v548_v26 = vshrl.u32 %v885_v55, %v536_v52  ;;  %v551_v38 = vshrl.u32 %v886_v58, %v536_v52  ;;  %v539_v1 = vshrl.u32 %v888_v62, %v536_v52  ;;  %v542_v3 = vshrl.u32 %v889_v2, %v536_v52 }
 0x20c   :  { %v545_v5 = vshrl.u32 %v884_v53, %v536_v52  ;;  %vm555_vm5 = vcmp.lt.s32.totalorder %v534_v56, 3  ;;  %vm554_vm6 = vcmp.lt.s32.totalorder %v534_v56, 2 }
 0x20d   :  { %v776_v11 = vpop.eup %775  ;;  %v549_v6 = vor.u32 %v548_v26, %v547_v54  ;;  %v552_v7 = vor.u32 %v551_v38, %v550_v57  ;;  %v540_v9 = vor.u32 %v539_v1, %v538_v61  ;;  %v543_v10 = vor.u32 %v542_v3, %v541_v63 }
 0x20e   :  { %v778_v12 = vpop.eup %777 }
 0x20f   :  { %v430_v13 = vadd.f32 %v778_v12, %v776_v11  ;;  %v780_v14 = vpop.eup %779 }
 0x211   :  { %v431_v0 = vadd.f32 %v780_v14, %v430_v13  ;;  %v566_v13 = vsel %vm556_vm3, %v552_v7, 1326507024 }
 0x212   :  { %v567_v18 = vsel %vm555_vm5, %v549_v6, %v566_v13 }
 0x213   :  { %781 = vrcp.f32 %v431_v0  ;;  %v561_v0 = vsel %vm553_vm4, %v540_v9, %v543_v10 }
 0x220   :  { %v782_v25 = vpop.eup %781 }
 0x221   :  { %v433_v30 = vmul.f32 %v782_v25, %v776_v11  ;;  %v435_v31 = vmul.f32 %v782_v25, %v778_v12  ;;  %v438_v32 = vmul.f32 %v782_v25, %v780_v14  ;;  %v546_v11 = vor.u32 %v545_v5, %v544_v4 }
 0x222   :  { %v562_v12 = vsel %vm556_vm3, %v549_v6, 920167782  ;;  %v529_v14 = vor.u32 8388608, %v528_v8  ;;  %v537_v25 = vshrl.u32 %v887_v60, %v536_v52  ;;  %v448_v8 = vsub.s32 7, %v970_v24 }
 0x223   :  { %v434_v34 = vmul.f32 %v433_v30, %v396_v29  ;;  %v436_v35 = vmul.f32 %v435_v31, %v401_v28  ;;  %v439_v37 = vmul.f32 %v438_v32, %v406_v33  ;;  %v563_v16 = vsel %vm555_vm5, %v546_v11, %v562_v12 }
 0x224   :  { %v565_v17 = vsel %vm553_vm4, %v543_v10, %v546_v11  ;;  %v569_v19 = vshll.u32 %v529_v14, 8  ;;  %v564_v20 = vsel %vm554_vm6, %v561_v0, %v563_v16  ;;  %v558_v30 = vsel %vm556_vm3, %v546_v11, 2102212464 }
 0x225   :  { %v437_v36 = vadd.f32 %v436_v35, %v434_v34  ;;  %v568_v21 = vsel %vm554_vm6, %v565_v17, %v567_v18  ;;  %v557_v31 = vsel %vm553_vm4, %v537_v25, %v540_v9  ;;  %v559_v32 = vsel %vm555_vm5, %v543_v10, %v558_v30 }
 0x226   :  { %v1020_v22 = vmul.u32.u64.low %v569_v19, %v564_v20  ;;  %v1021_v23 = vmul.u32.u64.high %v569_v19, %v564_v20, %v1020_v22  ;;  %v1023_v28 = vmul.u32.u64.low %v569_v19, %v568_v21  ;;  %v1024_v29 = vmul.u32.u64.high %v569_v19, %v568_v21, %v1023_v28 }
 0x227   :  { %v440_v39 = vadd.f32 %v439_v37, %v437_v36  ;;  %v560_v33 = vsel %vm554_vm6, %v557_v31, %v559_v32  ;;  %v449_v10 = vrot.slane %v974_v27, %v448_v8 }
 0x228   :  { %v579_v34 = vadd.s32 1, %v1021_v23  ;;  %vm578_vm7 = vc.u32 %v1024_v29, %v1020_v22  ;;  %v576_v35 = vmul.u32 %v569_v19, %v560_v33  ;;  %v577_v49 = vadd.s32 %v1020_v22, %v1024_v29 }
 0x229   :  { %v441_v40 = vpack.c.bf16 %v440_v39, %v440_v39 }
 0x22a   :  { %v580_v36 = vsel %vm578_vm7, %v579_v34, %v1021_v23 }
 0x22b   :  { %738 = vmatmul.mubr.msk.bf16.vlgmr.msra.gmra.mxu0 %vm94_vm1, %v441_v40  ;;  %v581_v37 = vadd.s32 %v580_v36, %v576_v35 }
 0x22d   :  { %v582_v39 = vadd.s32 536870912, %v581_v37 }
 0x22f   :  { %v583_v40 = vshrl.u32 %v582_v39, 30 }
 0x231   :  { %v584_v41 = vshll.u32 %v583_v40, 30  ;;  %v607_v62 = vsub.s32 4, %v583_v40 }
 0x233   :  { %v585_v42 = vsub.s32 %v581_v37, %v584_v41  ;;  %v608_v63 = vsel %vm523_vm9, %v607_v62, %v583_v40 }
 0x234   :  { %v610_v1 = vsel %vm522_vm10, 0, %v608_v63 }
 0x235   :  { %v587_v43 = vsub.s32 0, %v585_v42  ;;  %v614_v2 = vadd.s32 3, %v610_v1 }
 0x237   :  { %v661_v15 = vmin.u32 %v587_v43, %v585_v42  ;;  %v615_v5 = vand.u32 3, %v614_v2 }
 0x239   :  { %v589_v44 = vclz %v661_v15  ;;  %vm617_vm11 = vcmp.eq.s32.totalorder %v615_v5, 0  ;;  %vm620_vm12 = vcmp.eq.s32.totalorder %v615_v5, 2  ;;  %vm616_vm13 = vcmp.lt.s32.totalorder %v615_v5, 2 }
 0x23b   :  { %v662_v46 = vadd.s32 4294967294, %v589_v44 }
 0x23d   :  { %vm663_vm8 = vcmp.lt.s32.totalorder %v662_v46, 0 }
 0x23e   :  { %v592_v47 = vsel %vm663_vm8, 0, %v662_v46 }
 0x23f   :  { %v597_v48 = vsub.s32 4294967266, %v592_v47  ;;  %v593_v50 = vsub.s32 32, %v592_v47  ;;  %v594_v52 = vshll.u32 %v585_v42, %v592_v47 }
 0x241   :  { %v598_v51 = vadd.s32 127, %v597_v48  ;;  %v595_v53 = vshrl.u32 %v577_v49, %v593_v50 }
 0x243   :  { %v599_v54 = vshll.u32 %v598_v51, 23  ;;  %v596_v55 = vor.u32 %v595_v53, %v594_v52 }
 0x245   :  { %v600_v26 = vor.u32 4788187, %v599_v54  ;;  %v603_v57 = vcvt.s32.f32 %v596_v55 }
 0x247   :  { %v601_v56 = vand.u32 2147483647, %v600_v26 }
 0x249   :  { %v604_v58 = vmul.f32 %v603_v57, %v601_v56 }
 0x24b   :  { %v605_v38 = vxor.u32 2147483648, %v604_v58 }
 0x24d   :  { %v606_v60 = vsel %vm523_vm9, %v605_v38, %v604_v58 }
 0x24e   :  { %v609_v61 = vsel %vm522_vm10, %v1006_v45, %v606_v60 }
 0x24f   :  { %783 = vcosq.f32 %v609_v61 }
 0x250   :  { %785 = vsinq.f32 %v609_v61 }
 0x25c   :  { %v784_v3 = vpop.eup %783 }
 0x25d   :  { %v786_v4 = vpop.eup %785  ;;  %v621_v7 = vxor.u32 2147483648, %v784_v3 }
 0x25e   :  { %v618_v6 = vxor.u32 2147483648, %v786_v4 }
 0x25f   :  { %v622_v9 = vsel %vm620_vm12, %v621_v7, %v786_v4 }
 0x260   :  { %v619_v59 = vsel %vm617_vm11, %v784_v3, %v618_v6 }
 0x261   :  { %v623_v11 = vsel %vm616_vm13, %v619_v59, %v622_v9 }
 0x262   :  { %v624_v14 = vsel %vm613_vm14, nan, %v623_v11 }
 0x2eb   :  { %v499_v12 = vpop.f32.mrf.mxu0 }
 0x2ec   :  { %v500_v13 = vadd.f32 %v499_v12, %v449_v10 }
 0x2ed   :  { %v739_v0 = vpop.f32.mrf.mxu0 }
 0x2ee   :  { %v625_v16 = vadd.f32 %v624_v14, %v500_v13 }
 0x2ef   :  { %v502_v17 = vpop.f32.mrf.mxu0 }
 0x2f0   :  { %626 = vst.msk [vmem:[#allocation8] sm:$0xff] %vm94_vm1, %v625_v16 }
 0x2f1   :  { %v740_v18 = vpop.f32.mrf.mxu0 }
 0x2f2   :  { %631 = vsyncadd [#allocation4], 96  ;;  %s890_s1 = smov [#allocation8]  }
 0x2f3   :  { %s632_s13 = sshll.u32 %s890_s1, 4  ;;  %s633_s13 = int_to_ptr.vmem [resolvable:$true] %s632_s13 }
 0x2f4   :  { %s847_s14 = scalar_lea.vmem %s633_s13, 32  ;;  %s851_s15 = scalar_lea.vmem %s633_s13, 128 }
 0x2f5   :  { %p848_p1 = scmp.ne.s32.totalorder %s633_s13, %s847_s14  ;;  %p852_p2 = scmp.lt.s32.totalorder %s633_s13, %s633_s13 }
 0x2f6   :  { %p853_p3 = scmp.lt.s32.totalorder %s851_s15, %s847_s14 }
 0x2f8   :  { %p854_p4 = por %p853_p3, %p852_p2 }
 0x2fa   :  { %p855_p5 = pnand %p854_p4, %p848_p1 }
 0x2fc   :  { %858 = shalt.err (!%p855_p5)
}
 0x2fd   :  { %s891_s16 = smov 32   ;;  %s892_s17 = smov 2  }
 0x2fe   :  { %638 = dma.vmem_to_hbm [thread:$0]  %s633_s13, 32, %s1050_s5, [#allocation4], %s891_s16, %s891_s16, %s892_s17  }
 0x2ff   :  { %871 = dma.done.wait [#allocation4], 128  }
 0x300   :  { %872 = vsyncadd [#allocation4], 4294967168 }
 0x301   :  { %642 = vsyncpa [#allocation3], 1 }
 0x302   :  { %643 = vsyncpa [#allocation6], 1 }
 0x303   :  { %644 = vsyncpa [#allocation4], 1 }

// kernel: tpu_custom_call.1
= control target key start
LH: loop header
LB: loop body
LE: loop exit
PB: predicated region body
PF: predicated region fallthrough
CT: control target
= control target key end

     0   :  { %10 = vsyncpa [#allocation3], 0  ;;  %s1045_s0 = inlined_call_operand.vmem [shape: f32[2,64], index: 0, kind: input, shape index: {}]   ;;  %s1046_s1 = inlined_call_operand.vmem [shape: f32[2,1], index: 1, kind: input, shape index: {}]   ;;  %s1047_s2 = inlined_call_operand.hbm [shape: bf16[3,32,32], index: 2, kind: input, shape index: {}]   ;;  %s1048_s3 = inlined_call_operand.hbm [shape: bf16[32,32], index: 3, kind: input, shape index: {}]   ;;  %s1049_s4 = inlined_call_operand.hbm [shape: f32[16,32], index: 4, kind: input, shape index: {}]   ;;  %s1050_s5 = inlined_call_operand.hbm [shape: f32[2,32], index: 5, kind: output, shape index: {}]  }
   0x1   :  { %11 = vsyncpa [#allocation6], 0 }
   0x2   :  { %12 = vsyncpa [#allocation4], 0  ;;  %s873_s18 = smov [#allocation5]   ;;  %s874_s20 = smov [#allocation2]  }
   0x3   :  { %s34_s19 = sshll.u32 %s873_s18, 4  ;;  %s22_s21 = sshll.u32 %s874_s20, 4  ;;  %s35_s19 = int_to_ptr.vmem [resolvable:$true] %s34_s19  ;;  %s23_s21 = int_to_ptr.vmem [resolvable:$true] %s22_s21 }
   0x4   :  { %s795_s22 = scalar_lea.vmem %s35_s19, 256  ;;  %p800_p1 = scmp.lt.s32.totalorder %s35_s19, %s35_s19 }
   0x5   :  { %p796_p0 = scmp.ne.s32.totalorder %s35_s19, %s795_s22  ;;  %p801_p2 = scmp.lt.s32.totalorder %s795_s22, %s795_s22 }
   0x7   :  { %p802_p3 = por %p801_p2, %p800_p1 }
   0x9   :  { %p803_p4 = pnand %p802_p3, %p796_p0 }
   0xb   :  { %806 = shalt.err (!%p803_p4)
}
   0xc   :  { %s875_s23 = smov 64   ;;  %s876_s24 = smov 4  }
   0xd   :  { %40 = dma.hbm_to_vmem [thread:$0]  %s1048_s3, 256, %s35_s19, [#allocation6], %s875_s23, %s875_s23, %s876_s24  }
   0xe   :  { %s815_s27 = scalar_lea.vmem %s23_s21, 768  ;;  %p820_p6 = scmp.lt.s32.totalorder %s23_s21, %s23_s21 }
   0xf   :  { %p816_p5 = scmp.ne.s32.totalorder %s23_s21, %s815_s27  ;;  %p821_p7 = scmp.lt.s32.totalorder %s815_s27, %s815_s27 }
  0x11   :  { %p822_p8 = por %p821_p7, %p820_p6 }
  0x13   :  { %p823_p9 = pnand %p822_p8, %p816_p5 }
  0x15   :  { %826 = shalt.err (!%p823_p9)
}
  0x16   :  { %28 = dma.hbm_to_vmem [thread:$0]  %s1047_s2, 768, %s23_s21, [#allocation3], %s875_s23, %s875_s23, %s876_s24  }
  0x17   :  { %s877_s30 = smov [#allocation7]  }
  0x18   :  { %s46_s6 = sshll.u32 %s877_s30, 4  ;;  %s47_s6 = int_to_ptr.vmem [resolvable:$true] %s46_s6 }
  0x19   :  { %s835_s7 = scalar_lea.vmem %s47_s6, 256  ;;  %p840_p11 = scmp.lt.s32.totalorder %s47_s6, %s47_s6 }
  0x1a   :  { %p836_p10 = scmp.ne.s32.totalorder %s47_s6, %s835_s7  ;;  %p841_p12 = scmp.lt.s32.totalorder %s835_s7, %s835_s7 }
  0x1c   :  { %p842_p13 = por %p841_p12, %p840_p11 }
  0x1e   :  { %p843_p0 = pnand %p842_p13, %p836_p10 }
  0x20   :  { %846 = shalt.err (!%p843_p0)
}
  0x21   :  { %s878_s3 = smov 128   ;;  %s879_s8 = smov 8  }
  0x22   :  { %52 = dma.hbm_to_vmem [thread:$0]  %s1049_s4, 256, %s47_s6, [#allocation6], %s878_s3, %s878_s3, %s879_s8  }
  0x23   :  { %867 = dma.done.wait [#allocation3], 768  }
  0x24   :  { %868 = vsyncadd [#allocation3], 4294966528 }
  0x25   :  { %869 = dma.done.wait [#allocation6], 512  }
  0x26   :  { %870 = vsyncadd [#allocation6], 4294966784  ;;  %v880_v0 = vmov 0.0   ;;  %vm881_vm0 = vmmov 0   ;;  %v63_v1 = vld [vmem:[%s1045_s0] sm:$0xff]  ;;  %v767_v3 = vld [vmem:[#allocation2 + $0x18] sm:$0xff]   ;;  %v368_v23 = vlaneseq }
  0x27   :  { %693 = vmatprep.subr.bf16.mxu1 %v880_v0  ;;  %697 = vmatprep.mubr.msk.bf16.mxu1 %vm881_vm0, %v880_v0  ;;  %v64_v2 = vpack.c.bf16 %v63_v1, %v63_v1  ;;  %s882_s4 = smov 96   ;;  %v768_v4 = vld [vmem:[#allocation2 + $0x10] sm:$0xff]   ;;  %v771_v5 = vld [vmem:[#allocation2 + $0x8] sm:$0xff]   ;;  %vm94_vm1 = vcmask 261120   ;;  %v772_v7 = vld [vmem:[#allocation2] sm:$0xff]   ;;  %v883_v12 = vmov 0  }
  0x28   :  { %685 = vmatprep.subr.bf16.mxu0 %v880_v0  ;;  %689 = vmatprep.mubr.msk.bf16.mxu0 %vm881_vm0, %v880_v0  ;;  %v769_v6 = vld [vmem:[#allocation2 + $0x28] sm:$0xff]   ;;  %v770_v8 = vld [vmem:[#allocation2 + $0x20] sm:$0xff]   ;;  %v970_v24 = vshrl.u32 %v368_v23, 7  ;;  %v773_v61 = vld [vmem:[#allocation5 + $0x8] sm:$0xff]  }
  0x29   :  { %80 = vrot.lane.b32.xlu0 %v64_v2, %s882_s4  ;;  %694 = vmatpush3.bf16.msra.mxu1 %v767_v3  ;;  %v974_v27 = vld [vmem:[#allocation7] sm:$0xff]  ;;  %v774_v62 = vld [vmem:[#allocation5] sm:$0xff]  }
  0x2a   :  { %695 = vmatprep.subr.bf16.mxu1 %v880_v0  ;;  %686 = vmatpush3.bf16.msra.mxu0 %v771_v5  ;;  %v382_v25 = vsub.s32 2, %v970_v24  ;;  %v370_v26 = vsub.s32 0, %v970_v24  ;;  %v387_v32 = vsub.s32 3, %v970_v24  ;;  %v377_v38 = vsub.s32 1, %v970_v24  ;;  %v505_v60 = vld [vmem:[%s1046_s1] sm:$0xff] }
  0x2b   :  { %687 = vmatprep.subr.bf16.mxu0 %v880_v0  ;;  %765 = vset.pattern.permute.xlu1 %v883_v12 }
  0x2c   :  { %766 = vset.pattern.permute.xlu0 %v883_v12  ;;  %v383_v29 = vrot.slane %v974_v27, %v382_v25  ;;  %v371_v31 = vrot.slane %v974_v27, %v370_v26  ;;  %v388_v39 = vrot.slane %v974_v27, %v387_v32  ;;  %v378_v44 = vrot.slane %v974_v27, %v377_v38 }
  0x2d   :  { %696 = vmatpush3.bf16.msra.mxu1 %v768_v4 }
  0x2e   :  { %709 = vmatprep.subr.bf16.mxu1 %v880_v0  ;;  %688 = vmatpush3.bf16.msra.mxu0 %v772_v7 }
  0x2f   :  { %701 = vmatprep.subr.bf16.mxu0 %v880_v0 }
  0x30   :  { %698 = vmatmul.mubr.msk.bf16.vlgmr.msra.gmra.mxu1 %vm94_vm1, %v64_v2 }
  0x31   :  { %710 = vmatpush3.bf16.msra.mxu1 %v769_v6  ;;  %713 = vmatprep.mubr.msk.bf16.mxu1 %vm881_vm0, %v880_v0 }
  0x32   :  { %711 = vmatprep.subr.bf16.mxu1 %v880_v0 }
  0x35   :  { %712 = vmatpush3.bf16.msra.mxu1 %v770_v8 }
  0x36   :  { %725 = vmatprep.subr.bf16.mxu1 %v880_v0 }
  0x38   :  { %714 = vmatmul.mubr.msk.bf16.vlgmr.msra.gmra.mxu1 %vm94_vm1, %v64_v2 }
  0x39   :  { %726 = vmatpush3.bf16.msra.mxu1 %v771_v5  ;;  %729 = vmatprep.mubr.msk.bf16.mxu1 %vm881_vm0, %v880_v0 }
  0x3a   :  { %727 = vmatprep.subr.bf16.mxu1 %v880_v0 }
  0x3d   :  { %728 = vmatpush3.bf16.msra.mxu1 %v772_v7 }
  0x40   :  { %730 = vmatmul.mubr.msk.bf16.vlgmr.msra.gmra.mxu1 %vm94_vm1, %v64_v2 }
  0x9b   :  { %v81_v9 = vpop.permute.xlu0 %80 }
  0x9c   :  { %690 = vmatmul.mubr.msk.bf16.vlgmr.msra.gmra.mxu0 %vm94_vm1, %v81_v9 }
  0x9d   :  { %702 = vmatpush3.bf16.msra.mxu0 %v767_v3  ;;  %705 = vmatprep.mubr.msk.bf16.mxu0 %vm881_vm0, %v880_v0 }
  0x9e   :  { %703 = vmatprep.subr.bf16.mxu0 %v880_v0 }
  0xa1   :  { %704 = vmatpush3.bf16.msra.mxu0 %v768_v4 }
  0xa2   :  { %717 = vmatprep.subr.bf16.mxu0 %v880_v0 }
  0xa4   :  { %706 = vmatmul.mubr.msk.bf16.vlgmr.msra.gmra.mxu0 %vm94_vm1, %v81_v9 }
  0xa5   :  { %718 = vmatpush3.bf16.msra.mxu0 %v769_v6  ;;  %721 = vmatprep.mubr.msk.bf16.mxu0 %vm881_vm0, %v880_v0 }
  0xa6   :  { %719 = vmatprep.subr.bf16.mxu0 %v880_v0 }
  0xa9   :  { %720 = vmatpush3.bf16.msra.mxu0 %v770_v8 }
  0xaa   :  { %733 = vmatprep.subr.bf16.mxu0 %v880_v0 }
  0xac   :  { %722 = vmatmul.mubr.msk.bf16.vlgmr.msra.gmra.mxu0 %vm94_vm1, %v81_v9 }
  0xad   :  { %737 = vmatprep.mubr.msk.bf16.mxu0 %vm881_vm0, %v880_v0  ;;  %734 = vmatpush3.bf16.msra.mxu0 %v773_v61 }
  0xae   :  { %735 = vmatprep.subr.bf16.mxu0 %v880_v0 }
  0xb1   :  { %736 = vmatpush3.bf16.msra.mxu0 %v774_v62  ;;  %v888_v62 = vmov 2475754826  }
  0xf0   :  { %v187_v10 = vpop.f32.mrf.mxu1 }
  0xf1   :  { %v384_v36 = vadd.f32 %v383_v29, %v187_v10 }
  0xf2   :  { %v699_v11 = vpop.f32.mrf.mxu1 }
  0xf4   :  { %v190_v13 = vpop.f32.mrf.mxu1 }
  0xf6   :  { %v700_v14 = vpop.f32.mrf.mxu1 }
  0xf8   :  { %v968_v15 = vpop.f32.mrf.mxu1 }
  0xfa   :  { %v715_v16 = vpop.f32.mrf.mxu1 }
  0xfb   :  { %v399_v16 = vsub.s32 5, %v970_v24 }
  0xfc   :  { %v282_v17 = vpop.f32.mrf.mxu1 }
  0xfe   :  { %v716_v18 = vpop.f32.mrf.mxu1 }
  0xff   :  { %v394_v18 = vsub.s32 4, %v970_v24 }
 0x100   :  { %v361_v19 = vpop.f32.mrf.mxu1 }
 0x102   :  { %v731_v20 = vpop.f32.mrf.mxu1 }
 0x103   :  { %v400_v20 = vrot.slane %v974_v27, %v399_v16 }
 0x104   :  { %v364_v21 = vpop.f32.mrf.mxu1 }
 0x106   :  { %v732_v22 = vpop.f32.mrf.mxu1 }
 0x107   :  { %v395_v22 = vrot.slane %v974_v27, %v394_v18 }
 0x15c   :  { %v132_v28 = vpop.f32.mrf.mxu0 }
 0x15d   :  { %v362_v30 = vadd.f32 %v361_v19, %v132_v28  ;;  %v404_v19 = vsub.s32 6, %v970_v24  ;;  %v401_v28 = vadd.f32 %v400_v20, %v968_v15 }
 0x15e   :  { %v691_v33 = vpop.f32.mrf.mxu0 }
 0x15f   :  { %v367_v34 = vmul.f32 0.5, %v362_v30  ;;  %v405_v23 = vrot.slane %v974_v27, %v404_v19 }
 0x160   :  { %v135_v35 = vpop.f32.mrf.mxu0 }
 0x161   :  { %v372_v37 = vadd.f32 %v371_v31, %v367_v34 }
 0x162   :  { %v692_v40 = vpop.f32.mrf.mxu0 }
 0x163   :  { %v411_v41 = vmul.f32 %v384_v36, %v372_v37 }
 0x164   :  { %v227_v42 = vpop.f32.mrf.mxu0 }
 0x165   :  { %v373_v43 = vadd.f32 %v227_v42, %v187_v10  ;;  %v389_v45 = vadd.f32 %v388_v39, %v227_v42  ;;  %v412_v46 = vsel %vm94_vm1, %v411_v41, 0.0  ;;  %v326_v41 = vld [vmem:[#allocation7 + $0x8] sm:$0xff] }
 0x166   :  { %v707_v47 = vpop.f32.mrf.mxu0  ;;  %413 = vadd.xlane.f32.xlu1 %v412_v46  ;;  %v514_v42 = vrot.slane %v326_v41, %v370_v26 }
 0x167   :  { %v374_v48 = vmul.f32 0.5, %v373_v43  ;;  %v415_v49 = vmul.f32 %v389_v45, %v372_v37 }
 0x168   :  { %v230_v50 = vpop.f32.mrf.mxu0 }
 0x169   :  { %v379_v51 = vadd.f32 %v378_v44, %v374_v48  ;;  %v416_v52 = vsel %vm94_vm1, %v415_v49, 0.0 }
 0x16a   :  { %v708_v53 = vpop.f32.mrf.mxu0  ;;  %417 = vadd.xlane.f32.xlu1 %v416_v52 }
 0x16b   :  { %v407_v54 = vmul.f32 %v379_v51, %v372_v37  ;;  %v884_v53 = vmov 2102212464  }
 0x16c   :  { %v319_v55 = vpop.f32.mrf.mxu0 }
 0x16d   :  { %v408_v56 = vsel %vm94_vm1, %v407_v54, 0.0  ;;  %v390_v17 = vadd.f32 %v319_v55, %v968_v15  ;;  %v406_v33 = vadd.f32 %v405_v23, %v319_v55  ;;  %v519_v15 = vrot.slane %v326_v41, %v377_v38 }
 0x16e   :  { %v723_v57 = vpop.f32.mrf.mxu0  ;;  %409 = vadd.xlane.f32.xlu0 %v408_v56  ;;  %v885_v55 = vmov 920167782  }
 0x16f   :  { %v391_v21 = vmul.f32 0.5, %v390_v17 }
 0x170   :  { %v322_v58 = vpop.f32.mrf.mxu0 }
 0x171   :  { %v396_v29 = vadd.f32 %v395_v22, %v391_v21  ;;  %v886_v58 = vmov 1326507024  }
 0x172   :  { %v724_v59 = vpop.f32.mrf.mxu0 }
 0x17b   :  { %508 = vperm.xlu1 %765, %v505_v60   ;;  %v887_v60 = vmov 683565275  }
 0x1ef   :  { %v414_v63 = vpop.xlane.xlu1 %413 }
 0x1f3   :  { %v418_v3 = vpop.xlane.xlu1 %417 }
 0x1f7   :  { %v410_v1 = vpop.xlane.xlu0 %409  ;;  %v509_v43 = vpop.permute.xlu1 %508 }
 0x1f8   :  { %v419_v2 = vmax.f32 %v410_v1, %v414_v63  ;;  %v515_v44 = vmul.f32 %v514_v42, %v509_v43 }
 0x1fa   :  { %v420_v4 = vmax.f32 %v419_v2, %v418_v3  ;;  %v1006_v45 = vadd.f32 %v519_v15, %v515_v44  ;;  %v889_v2 = vmov 2131351028  }
 0x1fc   :  { %v421_v5 = vsub.f32 %v410_v1, %v420_v4  ;;  %v424_v6 = vsub.f32 %v414_v63, %v420_v4  ;;  %v427_v7 = vsub.f32 %v418_v3, %v420_v4  ;;  %v524_v46 = vand.u32 2139095040, %v1006_v45 }
 0x1fd   :  { %v521_v59 = vand.u32 2147483647, %v1006_v45  ;;  %vm523_vm9 = vcmp.lt.s32.totalorder %v1006_v45, 0  ;;  %vm613_vm14 = vweird.f32 %v1006_v45 }
 0x1fe   :  { %v422_v8 = vmul.f32 1.442695, %v421_v5  ;;  %v425_v9 = vmul.f32 1.442695, %v424_v6  ;;  %v428_v10 = vmul.f32 1.442695, %v427_v7 }
 0x1ff   :  { %v525_v47 = vshrl.u32 %v524_v46, 23  ;;  %vm522_vm10 = vcmp.le.f32.partialorder %v521_v59, 0.7853982 }
 0x200   :  { %775 = vpow2.f32 %v422_v8  ;;  %v528_v8 = vand.u32 8388607, %v521_v59 }
 0x201   :  { %777 = vpow2.f32 %v425_v9  ;;  %v660_v48 = vadd.s32 4294967169, %v525_v47 }
 0x202   :  { %779 = vpow2.f32 %v428_v10 }
 0x203   :  { %v531_v49 = vadd.s32 1, %v660_v48 }
 0x205   :  { %vm532_vm2 = vcmp.gt.s32.totalorder %v531_v49, 0 }
 0x206   :  { %v533_v50 = vsel %vm532_vm2, %v531_v49, 0 }
 0x207   :  { %v535_v51 = vand.u32 31, %v533_v50  ;;  %v534_v56 = vshrl.u32 %v533_v50, 5 }
 0x209   :  { %v536_v52 = vsub.s32 32, %v535_v51  ;;  %v547_v54 = vshll.u32 %v884_v53, %v535_v51  ;;  %v550_v57 = vshll.u32 %v885_v55, %v535_v51  ;;  %v538_v61 = vshll.u32 %v887_v60, %v535_v51 }
 0x20a   :  { %v541_v63 = vshll.u32 %v888_v62, %v535_v51  ;;  %v544_v4 = vshll.u32 %v889_v2, %v535_v51  ;;  %vm556_vm3 = vcmp.lt.s32.totalorder %v534_v56, 4  ;;  %vm553_vm4 = vcmp.lt.s32.totalorder %v534_v56, 1 }
 0x20b   :  { %v548_v26 = vshrl.u32 %v885_v55, %v536_v52  ;;  %v551_v38 = vshrl.u32 %v886_v58, %v536_v52  ;;  %v539_v1 = vshrl.u32 %v888_v62, %v536_v52  ;;  %v542_v3 = vshrl.u32 %v889_v2, %v536_v52 }
 0x20c   :  { %v545_v5 = vshrl.u32 %v884_v53, %v536_v52  ;;  %vm555_vm5 = vcmp.lt.s32.totalorder %v534_v56, 3  ;;  %vm554_vm6 = vcmp.lt.s32.totalorder %v534_v56, 2 }
 0x20d   :  { %v776_v11 = vpop.eup %775  ;;  %v549_v6 = vor.u32 %v548_v26, %v547_v54  ;;  %v552_v7 = vor.u32 %v551_v38, %v550_v57  ;;  %v540_v9 = vor.u32 %v539_v1, %v538_v61  ;;  %v543_v10 = vor.u32 %v542_v3, %v541_v63 }
 0x20e   :  { %v778_v12 = vpop.eup %777 }
 0x20f   :  { %v430_v13 = vadd.f32 %v778_v12, %v776_v11  ;;  %v780_v14 = vpop.eup %779 }
 0x211   :  { %v431_v0 = vadd.f32 %v780_v14, %v430_v13  ;;  %v566_v13 = vsel %vm556_vm3, %v552_v7, 1326507024 }
 0x212   :  { %v567_v18 = vsel %vm555_vm5, %v549_v6, %v566_v13 }
 0x213   :  { %781 = vrcp.f32 %v431_v0  ;;  %v561_v0 = vsel %vm553_vm4, %v540_v9, %v543_v10 }
 0x220   :  { %v782_v25 = vpop.eup %781 }
 0x221   :  { %v433_v30 = vmul.f32 %v782_v25, %v776_v11  ;;  %v435_v31 = vmul.f32 %v782_v25, %v778_v12  ;;  %v438_v32 = vmul.f32 %v782_v25, %v780_v14  ;;  %v546_v11 = vor.u32 %v545_v5, %v544_v4 }
 0x222   :  { %v562_v12 = vsel %vm556_vm3, %v549_v6, 920167782  ;;  %v529_v14 = vor.u32 8388608, %v528_v8  ;;  %v537_v25 = vshrl.u32 %v887_v60, %v536_v52  ;;  %v448_v8 = vsub.s32 7, %v970_v24 }
 0x223   :  { %v434_v34 = vmul.f32 %v433_v30, %v396_v29  ;;  %v436_v35 = vmul.f32 %v435_v31, %v401_v28  ;;  %v439_v37 = vmul.f32 %v438_v32, %v406_v33  ;;  %v563_v16 = vsel %vm555_vm5, %v546_v11, %v562_v12 }
 0x224   :  { %v565_v17 = vsel %vm553_vm4, %v543_v10, %v546_v11  ;;  %v569_v19 = vshll.u32 %v529_v14, 8  ;;  %v564_v20 = vsel %vm554_vm6, %v561_v0, %v563_v16  ;;  %v558_v30 = vsel %vm556_vm3, %v546_v11, 2102212464 }
 0x225   :  { %v437_v36 = vadd.f32 %v436_v35, %v434_v34  ;;  %v568_v21 = vsel %vm554_vm6, %v565_v17, %v567_v18  ;;  %v557_v31 = vsel %vm553_vm4, %v537_v25, %v540_v9  ;;  %v559_v32 = vsel %vm555_vm5, %v543_v10, %v558_v30 }
 0x226   :  { %v1020_v22 = vmul.u32.u64.low %v569_v19, %v564_v20  ;;  %v1021_v23 = vmul.u32.u64.high %v569_v19, %v564_v20, %v1020_v22  ;;  %v1023_v28 = vmul.u32.u64.low %v569_v19, %v568_v21  ;;  %v1024_v29 = vmul.u32.u64.high %v569_v19, %v568_v21, %v1023_v28 }
 0x227   :  { %v440_v39 = vadd.f32 %v439_v37, %v437_v36  ;;  %v560_v33 = vsel %vm554_vm6, %v557_v31, %v559_v32  ;;  %v449_v10 = vrot.slane %v974_v27, %v448_v8 }
 0x228   :  { %v579_v34 = vadd.s32 1, %v1021_v23  ;;  %vm578_vm7 = vc.u32 %v1024_v29, %v1020_v22  ;;  %v576_v35 = vmul.u32 %v569_v19, %v560_v33  ;;  %v577_v49 = vadd.s32 %v1020_v22, %v1024_v29 }
 0x229   :  { %v441_v40 = vpack.c.bf16 %v440_v39, %v440_v39 }
 0x22a   :  { %v580_v36 = vsel %vm578_vm7, %v579_v34, %v1021_v23 }
 0x22b   :  { %738 = vmatmul.mubr.msk.bf16.vlgmr.msra.gmra.mxu0 %vm94_vm1, %v441_v40  ;;  %v581_v37 = vadd.s32 %v580_v36, %v576_v35 }
 0x22d   :  { %v582_v39 = vadd.s32 536870912, %v581_v37 }
 0x22f   :  { %v583_v40 = vshrl.u32 %v582_v39, 30 }
 0x231   :  { %v584_v41 = vshll.u32 %v583_v40, 30  ;;  %v607_v62 = vsub.s32 4, %v583_v40 }
 0x233   :  { %v585_v42 = vsub.s32 %v581_v37, %v584_v41  ;;  %v608_v63 = vsel %vm523_vm9, %v607_v62, %v583_v40 }
 0x234   :  { %v610_v1 = vsel %vm522_vm10, 0, %v608_v63 }
 0x235   :  { %v587_v43 = vsub.s32 0, %v585_v42  ;;  %v614_v2 = vadd.s32 3, %v610_v1 }
 0x237   :  { %v661_v15 = vmin.u32 %v587_v43, %v585_v42  ;;  %v615_v5 = vand.u32 3, %v614_v2 }
 0x239   :  { %v589_v44 = vclz %v661_v15  ;;  %vm617_vm11 = vcmp.eq.s32.totalorder %v615_v5, 0  ;;  %vm620_vm12 = vcmp.eq.s32.totalorder %v615_v5, 2  ;;  %vm616_vm13 = vcmp.lt.s32.totalorder %v615_v5, 2 }
 0x23b   :  { %v662_v46 = vadd.s32 4294967294, %v589_v44 }
 0x23d   :  { %vm663_vm8 = vcmp.lt.s32.totalorder %v662_v46, 0 }
 0x23e   :  { %v592_v47 = vsel %vm663_vm8, 0, %v662_v46 }
 0x23f   :  { %v597_v48 = vsub.s32 4294967266, %v592_v47  ;;  %v593_v50 = vsub.s32 32, %v592_v47  ;;  %v594_v52 = vshll.u32 %v585_v42, %v592_v47 }
 0x241   :  { %v598_v51 = vadd.s32 127, %v597_v48  ;;  %v595_v53 = vshrl.u32 %v577_v49, %v593_v50 }
 0x243   :  { %v599_v54 = vshll.u32 %v598_v51, 23  ;;  %v596_v55 = vor.u32 %v595_v53, %v594_v52 }
 0x245   :  { %v600_v26 = vor.u32 4788187, %v599_v54  ;;  %v603_v57 = vcvt.s32.f32 %v596_v55 }
 0x247   :  { %v601_v56 = vand.u32 2147483647, %v600_v26 }
 0x249   :  { %v604_v58 = vmul.f32 %v603_v57, %v601_v56 }
 0x24b   :  { %v605_v38 = vxor.u32 2147483648, %v604_v58 }
 0x24d   :  { %v606_v60 = vsel %vm523_vm9, %v605_v38, %v604_v58 }
 0x24e   :  { %v609_v61 = vsel %vm522_vm10, %v1006_v45, %v606_v60 }
 0x24f   :  { %783 = vcosq.f32 %v609_v61 }
 0x250   :  { %785 = vsinq.f32 %v609_v61 }
 0x25c   :  { %v784_v3 = vpop.eup %783 }
 0x25d   :  { %v786_v4 = vpop.eup %785  ;;  %v621_v7 = vxor.u32 2147483648, %v784_v3 }
 0x25e   :  { %v618_v6 = vxor.u32 2147483648, %v786_v4 }
 0x25f   :  { %v622_v9 = vsel %vm620_vm12, %v621_v7, %v786_v4 }
 0x260   :  { %v619_v59 = vsel %vm617_vm11, %v784_v3, %v618_v6 }
 0x261   :  { %v623_v11 = vsel %vm616_vm13, %v619_v59, %v622_v9 }
 0x262   :  { %v624_v14 = vsel %vm613_vm14, nan, %v623_v11 }
 0x2eb   :  { %v499_v12 = vpop.f32.mrf.mxu0 }
 0x2ec   :  { %v500_v13 = vadd.f32 %v499_v12, %v449_v10 }
 0x2ed   :  { %v739_v0 = vpop.f32.mrf.mxu0 }
 0x2ee   :  { %v625_v16 = vadd.f32 %v624_v14, %v500_v13 }
 0x2ef   :  { %v502_v17 = vpop.f32.mrf.mxu0 }
 0x2f0   :  { %626 = vst.msk [vmem:[#allocation8] sm:$0xff] %vm94_vm1, %v625_v16 }
 0x2f1   :  { %v740_v18 = vpop.f32.mrf.mxu0 }
 0x2f2   :  { %631 = vsyncadd [#allocation4], 96  ;;  %s890_s1 = smov [#allocation8]  }
 0x2f3   :  { %s632_s13 = sshll.u32 %s890_s1, 4  ;;  %s633_s13 = int_to_ptr.vmem [resolvable:$true] %s632_s13 }
 0x2f4   :  { %s847_s14 = scalar_lea.vmem %s633_s13, 32  ;;  %s851_s15 = scalar_lea.vmem %s633_s13, 128 }
 0x2f5   :  { %p848_p1 = scmp.ne.s32.totalorder %s633_s13, %s847_s14  ;;  %p852_p2 = scmp.lt.s32.totalorder %s633_s13, %s633_s13 }
 0x2f6   :  { %p853_p3 = scmp.lt.s32.totalorder %s851_s15, %s847_s14 }
 0x2f8   :  { %p854_p4 = por %p853_p3, %p852_p2 }
 0x2fa   :  { %p855_p5 = pnand %p854_p4, %p848_p1 }
 0x2fc   :  { %858 = shalt.err (!%p855_p5)
}
 0x2fd   :  { %s891_s16 = smov 32   ;;  %s892_s17 = smov 2  }
 0x2fe   :  { %638 = dma.vmem_to_hbm [thread:$0]  %s633_s13, 32, %s1050_s5, [#allocation4], %s891_s16, %s891_s16, %s892_s17  }
 0x2ff   :  { %871 = dma.done.wait [#allocation4], 128  }
 0x300   :  { %872 = vsyncadd [#allocation4], 4294967168 }
 0x301   :  { %642 = vsyncpa [#allocation3], 1 }
 0x302   :  { %643 = vsyncpa [#allocation6], 1 }
 0x303   :  { %644 = vsyncpa [#allocation4], 1 }

</bundles_post_ra>
